<compile_context>
chip_gen: v7x
topology: tpu7x:2x2x1
jax: 0.10.0
libtpu: 0.0.40
codegen_flags: <defaults>
</compile_context>

<pallas_src>
import math
import functools

import jax
import jax.numpy as jnp
from jax.experimental import pallas as pl
from jax.experimental.pallas import tpu as pltpu


# ----------------------------------------------------------------------------
# Fused decoder kernel
# ----------------------------------------------------------------------------
def _layernorm_modulate(x, w, shift, scale):
    # LayerNorm over last dim (eps=1e-5, weight-only affine) + DiT modulate.
    mu = jnp.mean(x, axis=-1, keepdims=True)
    var = jnp.mean(jnp.square(x - mu), axis=-1, keepdims=True)
    xn = (x - mu) * jax.lax.rsqrt(var + 1e-5) * w
    return xn * (1.0 + scale) + shift


def _decoder_kernel(xe_ref, c_ref, cos_ref, sin_ref, mask_ref,
                    stem_w_ref, stem_b_ref,
                    ln1_ref, ln2_ref, adaw_ref, adab_ref,
                    qkvr_ref, attnw_ref, w1_ref, b1_ref, w2_ref, b2_ref,
                    fln_ref, fadaw_ref, fadab_ref, fw_ref, fb_ref,
                    o_ref, h_ref, *, n_heads):
    l = pl.program_id(0)
    depth = pl.num_programs(0)
    D = h_ref.shape[-1]
    dh = D // n_heads
    scale = 1.0 / math.sqrt(dh)

    # ---- stem prologue (layer 0 only): [input_proj(x) || emb_proj(set_emb)]
    @pl.when(l == 0)
    def _():
        h_ref[...] = (jnp.dot(xe_ref[...].astype(jnp.bfloat16), stem_w_ref[...],
                              preferred_element_type=jnp.float32)
                      + stem_b_ref[...])

    x = h_ref[...]                                           # (M, D) f32
    cb = c_ref[...].astype(jnp.bfloat16)                     # (M, cond)

    # adaLN modulation for this layer: (M, 6D)
    mod = (jnp.dot(cb, adaw_ref[0], preferred_element_type=jnp.float32)
           + adab_ref[0])
    sh_msa = mod[:, 0 * D:1 * D]
    sc_msa = mod[:, 1 * D:2 * D]
    g_msa = mod[:, 2 * D:3 * D]
    sh_mlp = mod[:, 3 * D:4 * D]
    sc_mlp = mod[:, 4 * D:5 * D]
    g_mlp = mod[:, 5 * D:6 * D]

    # ---- attention branch ----
    xm = _layernorm_modulate(x, ln1_ref[0], sh_msa, sc_msa)  # (M, D)
    # qkvr = [q | k | v | rotate_half(q) | rotate_half(k)] in one bf16 matmul
    qkvr = jnp.dot(xm.astype(jnp.bfloat16), qkvr_ref[0],
                   preferred_element_type=jnp.float32)       # (M, 5D)
    q = qkvr[:, 0 * D:1 * D]
    k = qkvr[:, 1 * D:2 * D]
    v = qkvr[:, 2 * D:3 * D]
    qr = qkvr[:, 3 * D:4 * D]
    kr = qkvr[:, 4 * D:5 * D]
    cos = cos_ref[...]
    sin = sin_ref[...]
    qb = (q * cos + qr * sin).astype(jnp.bfloat16)
    kb = (k * cos + kr * sin).astype(jnp.bfloat16)
    vb = v.astype(jnp.bfloat16)

    neg = mask_ref[...]                                      # (M, M) additive mask
    heads = []
    for hh in range(n_heads):
        lo, hi = hh * dh, (hh + 1) * dh
        s = jax.lax.dot_general(qb[:, lo:hi], kb[:, lo:hi],
                                (((1,), (1,)), ((), ())),
                                preferred_element_type=jnp.float32)
        s = s * scale + neg                                  # block cross-batch
        m = jnp.max(s, axis=-1, keepdims=True)
        p = jnp.exp(s - m)
        p = p * pl.reciprocal(jnp.sum(p, axis=-1, keepdims=True), approx=True)
        heads.append(jnp.dot(p.astype(jnp.bfloat16), vb[:, lo:hi],
                             preferred_element_type=jnp.float32))
    attn = jnp.concatenate(heads, axis=-1)                   # (M, D)

    a = jnp.dot(attn.astype(jnp.bfloat16), attnw_ref[0],
                preferred_element_type=jnp.float32)
    # TODO(synk): dropout treated as eval-mode identity (dropout == 0 here).
    x = x + g_msa * a

    # ---- MLP branch ----
    xm = _layernorm_modulate(x, ln2_ref[0], sh_mlp, sc_mlp)
    hmid = jnp.dot(xm.astype(jnp.bfloat16), w1_ref[0],
                   preferred_element_type=jnp.float32) + b1_ref[0]
    # GELU tanh approximation (matches nn.GELU(approximate='tanh')), f32 math
    hmid = 0.5 * hmid * (1.0 + jnp.tanh(0.7978845608028654 *
                                        (hmid + 0.044715 * hmid * hmid * hmid)))
    m2 = jnp.dot(hmid.astype(jnp.bfloat16), w2_ref[0],
                 preferred_element_type=jnp.float32) + b2_ref[0]
    x = x + g_mlp * m2
    h_ref[...] = x

    # ---- final layer epilogue (last layer only), lane-dense padded output ----
    @pl.when(l == depth - 1)
    def _():
        fmod = (jnp.dot(cb, fadaw_ref[...], preferred_element_type=jnp.float32)
                + fadab_ref[...])                            # (M, 2D)
        xf = _layernorm_modulate(x, fln_ref[...], fmod[:, :D], fmod[:, D:2 * D])
        o_ref[...] = (jnp.dot(xf.astype(jnp.bfloat16), fw_ref[...],
                              preferred_element_type=jnp.float32)
                      + fb_ref[...])


# ----------------------------------------------------------------------------
# Plain-JAX helpers (constant-folded / fused by XLA)
# ----------------------------------------------------------------------------
def timestep_sinusoid(t, dim, max_period=10000.0):
    half = dim // 2
    freqs = jnp.exp(-math.log(max_period) * jnp.arange(half, dtype=jnp.float32) / half)
    args = t.astype(jnp.float32)[:, None] * freqs[None, :]
    return jnp.concatenate([jnp.cos(args), jnp.sin(args)], axis=-1)


def rotary_tables(seq_len, dim, base=10000.0):
    inv_freq = 1.0 / (base ** (jnp.arange(0, dim, 2, dtype=jnp.float32) / dim))
    tt = jnp.arange(seq_len, dtype=jnp.float32)
    freqs = jnp.einsum("i,j->ij", tt, inv_freq)          # (S, dim//2)
    emb = jnp.concatenate([freqs, freqs], axis=-1)       # (S, dim)
    return jnp.cos(emb), jnp.sin(emb)


def rotate_half_matrix(n_heads, dh):
    """Block-diagonal (D,D) matrix M s.t. x @ M == rotate_half(x) per head."""
    i = jnp.arange(dh)
    r = (jnp.equal(i[None, :], i[:, None] + dh // 2).astype(jnp.float32)
         - jnp.equal(i[None, :], i[:, None] - dh // 2).astype(jnp.float32))
    return jnp.kron(jnp.eye(n_heads, dtype=jnp.float32), r)


# ----------------------------------------------------------------------------
# Parameter construction (deterministic synthetic init, PyTorch-layout params)
# ----------------------------------------------------------------------------
def _lin_params(key, fan_in, fan_out, scale=0.02):
    kw, kb = jax.random.split(key)
    w = jax.random.normal(kw, (fan_in, fan_out), jnp.float32) * scale
    b = jax.random.normal(kb, (fan_out,), jnp.float32) * scale
    return w, b


def init_params(key, cfg):
    D = cfg["hidden_dim"] * 2
    cond = cfg["cond_dim"]
    keys = iter(jax.random.split(key, 64))
    p = {}
    p["input_proj_w"], p["input_proj_b"] = _lin_params(next(keys), cfg["input_dim"], cfg["hidden_dim"])
    p["emb_proj_w"], p["emb_proj_b"] = _lin_params(next(keys), cfg["enc_hidden_dim"], cfg["hidden_dim"])
    p["te_w1"], p["te_b1"] = _lin_params(next(keys), cfg["freq_dim"], cond)
    p["te_w2"], p["te_b2"] = _lin_params(next(keys), cond, cond)

    blocks = []
    for _ in range(cfg["depth"]):
        b = {}
        b["ln1_w"] = jnp.ones((D,), jnp.float32)
        b["ln2_w"] = jnp.ones((D,), jnp.float32)
        b["qkv_w"], _ = _lin_params(next(keys), D, 3 * D)        # bias=False
        b["attn_out_w"], _ = _lin_params(next(keys), D, D)       # bias=False
        b["mlp_w1"], b["mlp_b1"] = _lin_params(next(keys), D, 4 * D)
        b["mlp_w2"], b["mlp_b2"] = _lin_params(next(keys), 4 * D, D)
        b["adaln_w"], b["adaln_b"] = _lin_params(next(keys), cond, 6 * D)
        blocks.append(b)
    p["blocks"] = blocks

    p["final_ln_w"] = jnp.ones((D,), jnp.float32)
    p["final_adaln_w"], p["final_adaln_b"] = _lin_params(next(keys), cond, 2 * D)
    p["final_lin_w"], p["final_lin_b"] = _lin_params(next(keys), D, cfg["input_dim"])
    return p


def prepare_params(params, cfg, batch, seq_len):
    """Fuse / stack / bf16-convert weights ONCE (outside the jitted forward)."""
    hid = cfg["hidden_dim"]
    D = 2 * hid
    cond = cfg["cond_dim"]
    n_heads = cfg["num_heads"]
    dh = D // n_heads
    in_dim = cfg["input_dim"]
    enc = cfg["enc_hidden_dim"]
    out_dim = cfg["input_dim"]
    outp = max(128, ((out_dim + 127) // 128) * 128)       # lane-dense padded width
    M = batch * seq_len
    bf16 = jnp.bfloat16

    # stem: block-diagonal [input_proj | emb_proj] acting on concat(x, set_emb)
    stem_w = jnp.zeros((in_dim + enc, D), jnp.float32)
    stem_w = stem_w.at[:in_dim, :hid].set(params["input_proj_w"])
    stem_w = stem_w.at[in_dim:, hid:].set(params["emb_proj_w"])
    stem_b = jnp.concatenate([params["input_proj_b"], params["emb_proj_b"]])[None, :]

    # rotary tables tiled per head and per batch row
    cos, sin = rotary_tables(seq_len, dh)                 # (S, dh)
    cos_f = jnp.tile(jnp.tile(cos, (1, n_heads)), (batch, 1))   # (M, D)
    sin_f = jnp.tile(jnp.tile(sin, (1, n_heads)), (batch, 1))

    # additive mask blocking cross-batch attention on the flattened (M, M) scores
    ridx = jnp.arange(M) // seq_len
    mask = jnp.where(ridx[:, None] == ridx[None, :], 0.0, -1e30).astype(jnp.float32)

    # fold rotate_half into the QKV projection: W = [Wq | Wk | Wv | Wq@R | Wk@R]
    rot = rotate_half_matrix(n_heads, dh)                 # (D, D)

    def stack(fn):
        return jnp.stack([fn(b) for b in params["blocks"]], axis=0)

    qkvr_w = stack(lambda b: jnp.concatenate(
        [b["qkv_w"], b["qkv_w"][:, :D] @ rot, b["qkv_w"][:, D:2 * D] @ rot],
        axis=1)).astype(bf16)                             # (L, D, 5D)

    return dict(
        te_w1=params["te_w1"], te_b1=params["te_b1"],
        te_w2=params["te_w2"], te_b2=params["te_b2"],
        stem_w=stem_w.astype(bf16), stem_b=stem_b,
        cos=cos_f, sin=sin_f, mask=mask,
        ln1_w=stack(lambda b: b["ln1_w"][None, :]),               # (L,1,D)
        ln2_w=stack(lambda b: b["ln2_w"][None, :]),
        adaln_w=stack(lambda b: b["adaln_w"]).astype(bf16),       # (L,cond,6D)
        adaln_b=stack(lambda b: b["adaln_b"][None, :]),
        qkvr_w=qkvr_w,
        attn_out_w=stack(lambda b: b["attn_out_w"]).astype(bf16),
        mlp_w1=stack(lambda b: b["mlp_w1"]).astype(bf16),
        mlp_b1=stack(lambda b: b["mlp_b1"][None, :]),
        mlp_w2=stack(lambda b: b["mlp_w2"]).astype(bf16),
        mlp_b2=stack(lambda b: b["mlp_b2"][None, :]),
        final_ln_w=params["final_ln_w"][None, :],
        final_adaln_w=params["final_adaln_w"].astype(bf16),
        final_adaln_b=params["final_adaln_b"][None, :],
        final_lin_w=jnp.zeros((D, outp), jnp.float32)
            .at[:, :out_dim].set(params["final_lin_w"]).astype(bf16),
        final_lin_b=jnp.zeros((1, outp), jnp.float32)
            .at[0, :out_dim].set(params["final_lin_b"]),
    )


# ----------------------------------------------------------------------------
# Forward pass: one pallas_call for the whole decoder
# ----------------------------------------------------------------------------
def decoder_forward(prep, x, t, set_emb, cfg):
    B, S, _ = x.shape
    D = cfg["hidden_dim"] * 2
    cond = cfg["cond_dim"]
    n_heads = cfg["num_heads"]
    depth = cfg["depth"]
    out_dim = cfg["input_dim"]
    Hm = 4 * D
    M = B * S
    in_plus = cfg["input_dim"] + cfg["enc_hidden_dim"]
    outp = prep["final_lin_w"].shape[1]

    # conditioning: sinusoid -> Linear -> SiLU -> Linear -> SiLU (plain JAX, tiny)
    tf = timestep_sinusoid(t, cfg["freq_dim"])
    h1 = tf @ prep["te_w1"] + prep["te_b1"]
    h1 = h1 * jax.nn.sigmoid(h1)
    c = h1 @ prep["te_w2"] + prep["te_b2"]
    c = c * jax.nn.sigmoid(c)                              # (B, cond)
    c_exp = jnp.repeat(c, S, axis=0)                       # (M, cond)

    xe = jnp.concatenate([x, set_emb], axis=-1).reshape(M, in_plus)

    def cspec(shape):          # grid-invariant input
        nd = len(shape)
        return pl.BlockSpec(shape, lambda l, _nd=nd: (0,) * _nd)

    def lspec(shape):          # per-layer stacked weight, sliced along axis 0
        nd = len(shape)
        return pl.BlockSpec((1,) + shape, lambda l, _nd=nd: (l,) + (0,) * _nd)

    kern = functools.partial(_decoder_kernel, n_heads=n_heads)
    out = pl.pallas_call(
        kern,
        out_shape=jax.ShapeDtypeStruct((M, outp), jnp.float32),
        grid_spec=pltpu.PrefetchScalarGridSpec(
            num_scalar_prefetch=0,
            grid=(depth,),
            in_specs=[
                cspec((M, in_plus)),                 # xe
                cspec((M, cond)),                    # c (expanded per row)
                cspec((M, D)),                       # cos
                cspec((M, D)),                       # sin
                cspec((M, M)),                       # cross-batch mask
                cspec((in_plus, D)),                 # stem_w (block-diag)
                cspec((1, D)),                       # stem_b
                lspec((1, D)),                       # ln1_w
                lspec((1, D)),                       # ln2_w
                lspec((cond, 6 * D)),                # adaln_w
                lspec((1, 6 * D)),                   # adaln_b
                lspec((D, 5 * D)),                   # qkv+rot weight
                lspec((D, D)),                       # attn_out_w
                lspec((D, Hm)),                      # mlp_w1
                lspec((1, Hm)),                      # mlp_b1
                lspec((Hm, D)),                      # mlp_w2
                lspec((1, D)),                       # mlp_b2
                cspec((1, D)),                       # final_ln_w
                cspec((cond, 2 * D)),                # final_adaln_w
                cspec((1, 2 * D)),                   # final_adaln_b
                cspec((D, outp)),                    # final_lin_w (padded)
                cspec((1, outp)),                    # final_lin_b (padded)
            ],
            out_specs=pl.BlockSpec((M, outp), lambda l: (0, 0)),
            scratch_shapes=[pltpu.VMEM((M, D), jnp.float32)],   # resident h
        ),
        compiler_params=pltpu.CompilerParams(
            dimension_semantics=("arbitrary",)),
    )(xe, c_exp, prep["cos"], prep["sin"], prep["mask"],
      prep["stem_w"], prep["stem_b"],
      prep["ln1_w"], prep["ln2_w"], prep["adaln_w"], prep["adaln_b"],
      prep["qkvr_w"], prep["attn_out_w"],
      prep["mlp_w1"], prep["mlp_b1"], prep["mlp_w2"], prep["mlp_b2"],
      prep["final_ln_w"], prep["final_adaln_w"], prep["final_adaln_b"],
      prep["final_lin_w"], prep["final_lin_b"])

    return out[:, :out_dim].reshape(B, S, out_dim)


# ----------------------------------------------------------------------------
# Main
# ----------------------------------------------------------------------------
if __name__ == "__main__":
    cfg = dict(
        input_dim=16,        # config.encoder.input_dim
        enc_hidden_dim=16,   # config.encoder.hidden_dim
        hidden_dim=32,       # config.decoder.hidden_dim  (block width = 64)
        num_heads=4,         # config.decoder.num_heads   (head_dim = 16)
        cond_dim=32,         # config.decoder.conditioning_dim
        depth=2,             # config.decoder.depth
        freq_dim=256,        # TimestepEmbedder frequency_embedding_size
    )
    B, S = 2, 8

    key = jax.random.PRNGKey(0)
    kx, kt, ke, kp = jax.random.split(key, 4)
    x = jax.random.normal(kx, (B, S, cfg["input_dim"]), jnp.float32)
    t = jax.random.uniform(kt, (B,), jnp.float32)
    set_emb = jax.random.normal(ke, (B, S, cfg["enc_hidden_dim"]), jnp.float32)

    params = init_params(kp, cfg)
    prep = prepare_params(params, cfg, B, S)   # bf16 / stacked / fused, once

    fwd = jax.jit(functools.partial(decoder_forward, cfg=cfg))
    out = fwd(prep, x, t, set_emb)
    out = jax.block_until_ready(out)

    assert out.shape == (B, S, cfg["input_dim"]), out.shape
    assert bool(jnp.all(jnp.isfinite(out)))
    print("KERNEL_OK")
</pallas_src>

<mosaic_0001>
module attributes {stable_mosaic.version = 11 : i64} {
  func.func @_decoder_kernel(%arg0: i32, %arg1: memref<16x32xf32, #tpu.memory_space<vmem>>, %arg2: memref<16x32xf32, #tpu.memory_space<vmem>>, %arg3: memref<16x64xf32, #tpu.memory_space<vmem>>, %arg4: memref<16x64xf32, #tpu.memory_space<vmem>>, %arg5: memref<16x16xf32, #tpu.memory_space<vmem>>, %arg6: memref<32x64xbf16, #tpu.memory_space<vmem>>, %arg7: memref<1x64xf32, #tpu.memory_space<vmem>>, %arg8: memref<1x1x64xf32, #tpu.memory_space<vmem>>, %arg9: memref<1x1x64xf32, #tpu.memory_space<vmem>>, %arg10: memref<1x32x384xbf16, #tpu.memory_space<vmem>>, %arg11: memref<1x1x384xf32, #tpu.memory_space<vmem>>, %arg12: memref<1x64x320xbf16, #tpu.memory_space<vmem>>, %arg13: memref<1x64x64xbf16, #tpu.memory_space<vmem>>, %arg14: memref<1x64x256xbf16, #tpu.memory_space<vmem>>, %arg15: memref<1x1x256xf32, #tpu.memory_space<vmem>>, %arg16: memref<1x256x64xbf16, #tpu.memory_space<vmem>>, %arg17: memref<1x1x64xf32, #tpu.memory_space<vmem>>, %arg18: memref<1x64xf32, #tpu.memory_space<vmem>>, %arg19: memref<32x128xbf16, #tpu.memory_space<vmem>>, %arg20: memref<1x128xf32, #tpu.memory_space<vmem>>, %arg21: memref<64x128xbf16, #tpu.memory_space<vmem>>, %arg22: memref<1x128xf32, #tpu.memory_space<vmem>>, %arg23: memref<16x128xf32, #tpu.memory_space<vmem>>, %arg24: memref<16x64xf32, #tpu.memory_space<vmem>>) attributes {dimension_semantics = [#tpu.dimension_semantics<arbitrary>], iteration_bounds = array<i64: 2>, scalar_prefetch = 0 : i64, scratch_operands = 1 : i64, tpu.core_type = #tpu.core_type<tc>, window_params = [{pipeline_mode = #tpu.pipeline_mode<synchronous>, transform_indices = @transform_0, window_bounds = array<i64: 16, 32>}, {pipeline_mode = #tpu.pipeline_mode<synchronous>, transform_indices = @transform_1, window_bounds = array<i64: 16, 32>}, {pipeline_mode = #tpu.pipeline_mode<synchronous>, transform_indices = @transform_2, window_bounds = array<i64: 16, 64>}, {pipeline_mode = #tpu.pipeline_mode<synchronous>, transform_indices = @transform_3, window_bounds = array<i64: 16, 64>}, {pipeline_mode = #tpu.pipeline_mode<synchronous>, transform_indices = @transform_4, window_bounds = array<i64: 16, 16>}, {pipeline_mode = #tpu.pipeline_mode<synchronous>, transform_indices = @transform_5, window_bounds = array<i64: 32, 64>}, {pipeline_mode = #tpu.pipeline_mode<synchronous>, transform_indices = @transform_6, window_bounds = array<i64: 1, 64>}, {transform_indices = @transform_7, window_bounds = array<i64: 1, 1, 64>}, {transform_indices = @transform_8, window_bounds = array<i64: 1, 1, 64>}, {transform_indices = @transform_9, window_bounds = array<i64: 1, 32, 384>}, {transform_indices = @transform_10, window_bounds = array<i64: 1, 1, 384>}, {transform_indices = @transform_11, window_bounds = array<i64: 1, 64, 320>}, {transform_indices = @transform_12, window_bounds = array<i64: 1, 64, 64>}, {transform_indices = @transform_13, window_bounds = array<i64: 1, 64, 256>}, {transform_indices = @transform_14, window_bounds = array<i64: 1, 1, 256>}, {transform_indices = @transform_15, window_bounds = array<i64: 1, 256, 64>}, {transform_indices = @transform_16, window_bounds = array<i64: 1, 1, 64>}, {pipeline_mode = #tpu.pipeline_mode<synchronous>, transform_indices = @transform_17, window_bounds = array<i64: 1, 64>}, {pipeline_mode = #tpu.pipeline_mode<synchronous>, transform_indices = @transform_18, window_bounds = array<i64: 32, 128>}, {pipeline_mode = #tpu.pipeline_mode<synchronous>, transform_indices = @transform_19, window_bounds = array<i64: 1, 128>}, {pipeline_mode = #tpu.pipeline_mode<synchronous>, transform_indices = @transform_20, window_bounds = array<i64: 64, 128>}, {pipeline_mode = #tpu.pipeline_mode<synchronous>, transform_indices = @transform_21, window_bounds = array<i64: 1, 128>}, {pipeline_mode = #tpu.pipeline_mode<synchronous>, transform_indices = @transform_22, window_bounds = array<i64: 16, 128>}]} {
    %c0_i32 = arith.constant 0 : i32
    %0 = arith.cmpi eq, %arg0, %c0_i32 : i32
    %1 = arith.extui %0 : i1 to i32
    %c0_i32_0 = arith.constant 0 : i32
    %2 = arith.cmpi ne, %1, %c0_i32_0 : i32
    scf.if %2 {
      %c0_83 = arith.constant 0 : index
      %c0_84 = arith.constant 0 : index
      %210 = vector.load %arg1[%c0_83, %c0_84] : memref<16x32xf32, #tpu.memory_space<vmem>>, vector<16x32xf32>
      %211 = arith.truncf %210 : vector<16x32xf32> to vector<16x32xbf16>
      %c0_85 = arith.constant 0 : index
      %c0_86 = arith.constant 0 : index
      %212 = vector.load %arg6[%c0_85, %c0_86] : memref<32x64xbf16, #tpu.memory_space<vmem>>, vector<32x64xbf16>
      %cst_87 = arith.constant dense<0.000000e+00> : vector<16x64xf32>
      %213 = tpu.matmul %211, %212, %cst_87 {dimension_numbers = #tpu.dot_dimension_numbers<[1], [0], [0], [1], [0, 0, 1, 1], [], []>} : vector<16x32xbf16>, vector<32x64xbf16>, vector<16x64xf32> -> vector<16x64xf32>
      %c0_88 = arith.constant 0 : index
      %c0_89 = arith.constant 0 : index
      %214 = vector.load %arg7[%c0_88, %c0_89] : memref<1x64xf32, #tpu.memory_space<vmem>>, vector<1x64xf32>
      %215 = vector.broadcast %214 : vector<1x64xf32> to vector<16x64xf32>
      %216 = arith.addf %213, %215 : vector<16x64xf32>
      %c0_90 = arith.constant 0 : index
      %c0_91 = arith.constant 0 : index
      %217 = vector.load %arg24[%c0_90, %c0_91] : memref<16x64xf32, #tpu.memory_space<vmem>>, vector<16x64xf32>
      tpu.vector_store %arg24[%c0_90, %c0_91], %216 {strides = array<i32>} : memref<16x64xf32, #tpu.memory_space<vmem>>, vector<16x64xf32>,
    } else {
    }
    %c0 = arith.constant 0 : index
    %c0_1 = arith.constant 0 : index
    %3 = vector.load %arg24[%c0, %c0_1] : memref<16x64xf32, #tpu.memory_space<vmem>>, vector<16x64xf32>
    %c0_2 = arith.constant 0 : index
    %c0_3 = arith.constant 0 : index
    %4 = vector.load %arg2[%c0_2, %c0_3] : memref<16x32xf32, #tpu.memory_space<vmem>>, vector<16x32xf32>
    %5 = arith.truncf %4 : vector<16x32xf32> to vector<16x32xbf16>
    %c0_4 = arith.constant 0 : index
    %c0_5 = arith.constant 0 : index
    %c0_6 = arith.constant 0 : index
    %6 = vector.load %arg10[%c0_4, %c0_5, %c0_6] : memref<1x32x384xbf16, #tpu.memory_space<vmem>>, vector<1x32x384xbf16>
    %7 = vector.shape_cast %6 : vector<1x32x384xbf16> to vector<32x384xbf16>
    %cst = arith.constant dense<0.000000e+00> : vector<16x384xf32>
    %8 = tpu.matmul %5, %7, %cst {dimension_numbers = #tpu.dot_dimension_numbers<[1], [0], [0], [1], [0, 0, 1, 1], [], []>} : vector<16x32xbf16>, vector<32x384xbf16>, vector<16x384xf32> -> vector<16x384xf32>
    %c0_7 = arith.constant 0 : index
    %c0_8 = arith.constant 0 : index
    %c0_9 = arith.constant 0 : index
    %9 = vector.load %arg11[%c0_7, %c0_8, %c0_9] : memref<1x1x384xf32, #tpu.memory_space<vmem>>, vector<1x1x384xf32>
    %10 = vector.shape_cast %9 : vector<1x1x384xf32> to vector<1x384xf32>
    %11 = vector.broadcast %10 : vector<1x384xf32> to vector<16x384xf32>
    %12 = arith.addf %8, %11 : vector<16x384xf32>
    %13 = vector.extract_strided_slice %12 {offsets = [0, 0], sizes = [16, 64], strides = [1, 1]} : vector<16x384xf32> to vector<16x64xf32>
    %14 = vector.extract_strided_slice %12 {offsets = [0, 64], sizes = [16, 64], strides = [1, 1]} : vector<16x384xf32> to vector<16x64xf32>
    %15 = vector.extract_strided_slice %12 {offsets = [0, 128], sizes = [16, 64], strides = [1, 1]} : vector<16x384xf32> to vector<16x64xf32>
    %16 = vector.extract_strided_slice %12 {offsets = [0, 192], sizes = [16, 64], strides = [1, 1]} : vector<16x384xf32> to vector<16x64xf32>
    %17 = vector.extract_strided_slice %12 {offsets = [0, 256], sizes = [16, 64], strides = [1, 1]} : vector<16x384xf32> to vector<16x64xf32>
    %18 = vector.extract_strided_slice %12 {offsets = [0, 320], sizes = [16, 64], strides = [1, 1]} : vector<16x384xf32> to vector<16x64xf32>
    %c0_10 = arith.constant 0 : index
    %c0_11 = arith.constant 0 : index
    %c0_12 = arith.constant 0 : index
    %19 = vector.load %arg8[%c0_10, %c0_11, %c0_12] : memref<1x1x64xf32, #tpu.memory_space<vmem>>, vector<1x1x64xf32>
    %20 = vector.shape_cast %19 : vector<1x1x64xf32> to vector<1x64xf32>
    %cst_13 = arith.constant dense<0.000000e+00> : vector<16xf32>
    %21 = vector.multi_reduction <add>, %3, %cst_13 [1] : vector<16x64xf32> to vector<16xf32>
    %22 = vector.shape_cast %21 : vector<16xf32> to vector<16x1xf32>
    %cst_14 = arith.constant 6.400000e+01 : f32
    %23 = vector.broadcast %cst_14 : f32 to vector<16x1xf32>
    %24 = arith.divf %22, %23 : vector<16x1xf32>
    %25 = vector.broadcast %24 : vector<16x1xf32> to vector<16x64xf32>
    %26 = arith.subf %3, %25 : vector<16x64xf32>
    %27 = arith.mulf %26, %26 : vector<16x64xf32>
    %cst_15 = arith.constant dense<0.000000e+00> : vector<16xf32>
    %28 = vector.multi_reduction <add>, %27, %cst_15 [1] : vector<16x64xf32> to vector<16xf32>
    %29 = vector.shape_cast %28 : vector<16xf32> to vector<16x1xf32>
    %cst_16 = arith.constant 6.400000e+01 : f32
    %30 = vector.broadcast %cst_16 : f32 to vector<16x1xf32>
    %31 = arith.divf %29, %30 : vector<16x1xf32>
    %32 = vector.broadcast %24 : vector<16x1xf32> to vector<16x64xf32>
    %33 = arith.subf %3, %32 : vector<16x64xf32>
    %cst_17 = arith.constant 9.99999974E-6 : f32
    %34 = vector.broadcast %cst_17 : f32 to vector<16x1xf32>
    %35 = arith.addf %31, %34 : vector<16x1xf32>
    %36 = math.rsqrt %35 : vector<16x1xf32>
    %37 = vector.broadcast %36 : vector<16x1xf32> to vector<16x64xf32>
    %38 = arith.mulf %33, %37 : vector<16x64xf32>
    %39 = vector.broadcast %20 : vector<1x64xf32> to vector<16x64xf32>
    %40 = arith.mulf %38, %39 : vector<16x64xf32>
    %cst_18 = arith.constant 1.000000e+00 : f32
    %41 = vector.broadcast %cst_18 : f32 to vector<16x64xf32>
    %42 = arith.addf %41, %14 : vector<16x64xf32>
    %43 = arith.mulf %40, %42 : vector<16x64xf32>
    %44 = arith.addf %43, %13 : vector<16x64xf32>
    %45 = arith.truncf %44 : vector<16x64xf32> to vector<16x64xbf16>
    %c0_19 = arith.constant 0 : index
    %c0_20 = arith.constant 0 : index
    %c0_21 = arith.constant 0 : index
    %46 = vector.load %arg12[%c0_19, %c0_20, %c0_21] : memref<1x64x320xbf16, #tpu.memory_space<vmem>>, vector<1x64x320xbf16>
    %47 = vector.shape_cast %46 : vector<1x64x320xbf16> to vector<64x320xbf16>
    %cst_22 = arith.constant dense<0.000000e+00> : vector<16x320xf32>
    %48 = tpu.matmul %45, %47, %cst_22 {dimension_numbers = #tpu.dot_dimension_numbers<[1], [0], [0], [1], [0, 0, 1, 1], [], []>} : vector<16x64xbf16>, vector<64x320xbf16>, vector<16x320xf32> -> vector<16x320xf32>
    %49 = vector.extract_strided_slice %48 {offsets = [0, 0], sizes = [16, 64], strides = [1, 1]} : vector<16x320xf32> to vector<16x64xf32>
    %50 = vector.extract_strided_slice %48 {offsets = [0, 64], sizes = [16, 64], strides = [1, 1]} : vector<16x320xf32> to vector<16x64xf32>
    %51 = vector.extract_strided_slice %48 {offsets = [0, 128], sizes = [16, 64], strides = [1, 1]} : vector<16x320xf32> to vector<16x64xf32>
    %52 = vector.extract_strided_slice %48 {offsets = [0, 192], sizes = [16, 64], strides = [1, 1]} : vector<16x320xf32> to vector<16x64xf32>
    %53 = vector.extract_strided_slice %48 {offsets = [0, 256], sizes = [16, 64], strides = [1, 1]} : vector<16x320xf32> to vector<16x64xf32>
    %c0_23 = arith.constant 0 : index
    %c0_24 = arith.constant 0 : index
    %54 = vector.load %arg3[%c0_23, %c0_24] : memref<16x64xf32, #tpu.memory_space<vmem>>, vector<16x64xf32>
    %c0_25 = arith.constant 0 : index
    %c0_26 = arith.constant 0 : index
    %55 = vector.load %arg4[%c0_25, %c0_26] : memref<16x64xf32, #tpu.memory_space<vmem>>, vector<16x64xf32>
    %56 = arith.mulf %49, %54 : vector<16x64xf32>
    %57 = arith.mulf %52, %55 : vector<16x64xf32>
    %58 = arith.addf %56, %57 : vector<16x64xf32>
    %59 = arith.truncf %58 : vector<16x64xf32> to vector<16x64xbf16>
    %60 = arith.mulf %50, %54 : vector<16x64xf32>
    %61 = arith.mulf %53, %55 : vector<16x64xf32>
    %62 = arith.addf %60, %61 : vector<16x64xf32>
    %63 = arith.truncf %62 : vector<16x64xf32> to vector<16x64xbf16>
    %64 = arith.truncf %51 : vector<16x64xf32> to vector<16x64xbf16>
    %c0_27 = arith.constant 0 : index
    %c0_28 = arith.constant 0 : index
    %65 = vector.load %arg5[%c0_27, %c0_28] : memref<16x16xf32, #tpu.memory_space<vmem>>, vector<16x16xf32>
    %66 = vector.extract_strided_slice %59 {offsets = [0, 0], sizes = [16, 16], strides = [1, 1]} : vector<16x64xbf16> to vector<16x16xbf16>
    %67 = vector.extract_strided_slice %63 {offsets = [0, 0], sizes = [16, 16], strides = [1, 1]} : vector<16x64xbf16> to vector<16x16xbf16>
    %cst_29 = arith.constant dense<0.000000e+00> : vector<16x16xf32>
    %68 = tpu.matmul %66, %67, %cst_29 {dimension_numbers = #tpu.dot_dimension_numbers<[1], [1], [0], [0], [0, 0, 1, 0], [], []>} : vector<16x16xbf16>, vector<16x16xbf16>, vector<16x16xf32> -> vector<16x16xf32>
    %cst_30 = arith.constant 2.500000e-01 : f32
    %69 = vector.broadcast %cst_30 : f32 to vector<16x16xf32>
    %70 = arith.mulf %68, %69 : vector<16x16xf32>
    %71 = arith.addf %70, %65 : vector<16x16xf32>
    %cst_31 = arith.constant dense<0xFF800000> : vector<16xf32>
    %72 = vector.multi_reduction <maximumf>, %71, %cst_31 [1] : vector<16x16xf32> to vector<16xf32>
    %73 = vector.shape_cast %72 : vector<16xf32> to vector<16x1xf32>
    %74 = vector.broadcast %73 : vector<16x1xf32> to vector<16x16xf32>
    %75 = arith.subf %71, %74 : vector<16x16xf32>
    %76 = math.exp %75 : vector<16x16xf32>
    %cst_32 = arith.constant dense<0.000000e+00> : vector<16xf32>
    %77 = vector.multi_reduction <add>, %76, %cst_32 [1] : vector<16x16xf32> to vector<16xf32>
    %78 = vector.shape_cast %77 : vector<16xf32> to vector<16x1xf32>
    %79 = tpu.reciprocal %78 {approx = true} : vector<16x1xf32> -> vector<16x1xf32>
    %80 = vector.broadcast %79 : vector<16x1xf32> to vector<16x16xf32>
    %81 = arith.mulf %76, %80 : vector<16x16xf32>
    %82 = arith.truncf %81 : vector<16x16xf32> to vector<16x16xbf16>
    %83 = vector.extract_strided_slice %64 {offsets = [0, 0], sizes = [16, 16], strides = [1, 1]} : vector<16x64xbf16> to vector<16x16xbf16>
    %cst_33 = arith.constant dense<0.000000e+00> : vector<16x16xf32>
    %84 = tpu.matmul %82, %83, %cst_33 {dimension_numbers = #tpu.dot_dimension_numbers<[1], [0], [0], [1], [0, 0, 1, 1], [], []>} : vector<16x16xbf16>, vector<16x16xbf16>, vector<16x16xf32> -> vector<16x16xf32>
    %85 = vector.extract_strided_slice %59 {offsets = [0, 16], sizes = [16, 16], strides = [1, 1]} : vector<16x64xbf16> to vector<16x16xbf16>
    %86 = vector.extract_strided_slice %63 {offsets = [0, 16], sizes = [16, 16], strides = [1, 1]} : vector<16x64xbf16> to vector<16x16xbf16>
    %cst_34 = arith.constant dense<0.000000e+00> : vector<16x16xf32>
    %87 = tpu.matmul %85, %86, %cst_34 {dimension_numbers = #tpu.dot_dimension_numbers<[1], [1], [0], [0], [0, 0, 1, 0], [], []>} : vector<16x16xbf16>, vector<16x16xbf16>, vector<16x16xf32> -> vector<16x16xf32>
    %cst_35 = arith.constant 2.500000e-01 : f32
    %88 = vector.broadcast %cst_35 : f32 to vector<16x16xf32>
    %89 = arith.mulf %87, %88 : vector<16x16xf32>
    %90 = arith.addf %89, %65 : vector<16x16xf32>
    %cst_36 = arith.constant dense<0xFF800000> : vector<16xf32>
    %91 = vector.multi_reduction <maximumf>, %90, %cst_36 [1] : vector<16x16xf32> to vector<16xf32>
    %92 = vector.shape_cast %91 : vector<16xf32> to vector<16x1xf32>
    %93 = vector.broadcast %92 : vector<16x1xf32> to vector<16x16xf32>
    %94 = arith.subf %90, %93 : vector<16x16xf32>
    %95 = math.exp %94 : vector<16x16xf32>
    %cst_37 = arith.constant dense<0.000000e+00> : vector<16xf32>
    %96 = vector.multi_reduction <add>, %95, %cst_37 [1] : vector<16x16xf32> to vector<16xf32>
    %97 = vector.shape_cast %96 : vector<16xf32> to vector<16x1xf32>
    %98 = tpu.reciprocal %97 {approx = true} : vector<16x1xf32> -> vector<16x1xf32>
    %99 = vector.broadcast %98 : vector<16x1xf32> to vector<16x16xf32>
    %100 = arith.mulf %95, %99 : vector<16x16xf32>
    %101 = arith.truncf %100 : vector<16x16xf32> to vector<16x16xbf16>
    %102 = vector.extract_strided_slice %64 {offsets = [0, 16], sizes = [16, 16], strides = [1, 1]} : vector<16x64xbf16> to vector<16x16xbf16>
    %cst_38 = arith.constant dense<0.000000e+00> : vector<16x16xf32>
    %103 = tpu.matmul %101, %102, %cst_38 {dimension_numbers = #tpu.dot_dimension_numbers<[1], [0], [0], [1], [0, 0, 1, 1], [], []>} : vector<16x16xbf16>, vector<16x16xbf16>, vector<16x16xf32> -> vector<16x16xf32>
    %104 = vector.extract_strided_slice %59 {offsets = [0, 32], sizes = [16, 16], strides = [1, 1]} : vector<16x64xbf16> to vector<16x16xbf16>
    %105 = vector.extract_strided_slice %63 {offsets = [0, 32], sizes = [16, 16], strides = [1, 1]} : vector<16x64xbf16> to vector<16x16xbf16>
    %cst_39 = arith.constant dense<0.000000e+00> : vector<16x16xf32>
    %106 = tpu.matmul %104, %105, %cst_39 {dimension_numbers = #tpu.dot_dimension_numbers<[1], [1], [0], [0], [0, 0, 1, 0], [], []>} : vector<16x16xbf16>, vector<16x16xbf16>, vector<16x16xf32> -> vector<16x16xf32>
    %cst_40 = arith.constant 2.500000e-01 : f32
    %107 = vector.broadcast %cst_40 : f32 to vector<16x16xf32>
    %108 = arith.mulf %106, %107 : vector<16x16xf32>
    %109 = arith.addf %108, %65 : vector<16x16xf32>
    %cst_41 = arith.constant dense<0xFF800000> : vector<16xf32>
    %110 = vector.multi_reduction <maximumf>, %109, %cst_41 [1] : vector<16x16xf32> to vector<16xf32>
    %111 = vector.shape_cast %110 : vector<16xf32> to vector<16x1xf32>
    %112 = vector.broadcast %111 : vector<16x1xf32> to vector<16x16xf32>
    %113 = arith.subf %109, %112 : vector<16x16xf32>
    %114 = math.exp %113 : vector<16x16xf32>
    %cst_42 = arith.constant dense<0.000000e+00> : vector<16xf32>
    %115 = vector.multi_reduction <add>, %114, %cst_42 [1] : vector<16x16xf32> to vector<16xf32>
    %116 = vector.shape_cast %115 : vector<16xf32> to vector<16x1xf32>
    %117 = tpu.reciprocal %116 {approx = true} : vector<16x1xf32> -> vector<16x1xf32>
    %118 = vector.broadcast %117 : vector<16x1xf32> to vector<16x16xf32>
    %119 = arith.mulf %114, %118 : vector<16x16xf32>
    %120 = arith.truncf %119 : vector<16x16xf32> to vector<16x16xbf16>
    %121 = vector.extract_strided_slice %64 {offsets = [0, 32], sizes = [16, 16], strides = [1, 1]} : vector<16x64xbf16> to vector<16x16xbf16>
    %cst_43 = arith.constant dense<0.000000e+00> : vector<16x16xf32>
    %122 = tpu.matmul %120, %121, %cst_43 {dimension_numbers = #tpu.dot_dimension_numbers<[1], [0], [0], [1], [0, 0, 1, 1], [], []>} : vector<16x16xbf16>, vector<16x16xbf16>, vector<16x16xf32> -> vector<16x16xf32>
    %123 = vector.extract_strided_slice %59 {offsets = [0, 48], sizes = [16, 16], strides = [1, 1]} : vector<16x64xbf16> to vector<16x16xbf16>
    %124 = vector.extract_strided_slice %63 {offsets = [0, 48], sizes = [16, 16], strides = [1, 1]} : vector<16x64xbf16> to vector<16x16xbf16>
    %cst_44 = arith.constant dense<0.000000e+00> : vector<16x16xf32>
    %125 = tpu.matmul %123, %124, %cst_44 {dimension_numbers = #tpu.dot_dimension_numbers<[1], [1], [0], [0], [0, 0, 1, 0], [], []>} : vector<16x16xbf16>, vector<16x16xbf16>, vector<16x16xf32> -> vector<16x16xf32>
    %cst_45 = arith.constant 2.500000e-01 : f32
    %126 = vector.broadcast %cst_45 : f32 to vector<16x16xf32>
    %127 = arith.mulf %125, %126 : vector<16x16xf32>
    %128 = arith.addf %127, %65 : vector<16x16xf32>
    %cst_46 = arith.constant dense<0xFF800000> : vector<16xf32>
    %129 = vector.multi_reduction <maximumf>, %128, %cst_46 [1] : vector<16x16xf32> to vector<16xf32>
    %130 = vector.shape_cast %129 : vector<16xf32> to vector<16x1xf32>
    %131 = vector.broadcast %130 : vector<16x1xf32> to vector<16x16xf32>
    %132 = arith.subf %128, %131 : vector<16x16xf32>
    %133 = math.exp %132 : vector<16x16xf32>
    %cst_47 = arith.constant dense<0.000000e+00> : vector<16xf32>
    %134 = vector.multi_reduction <add>, %133, %cst_47 [1] : vector<16x16xf32> to vector<16xf32>
    %135 = vector.shape_cast %134 : vector<16xf32> to vector<16x1xf32>
    %136 = tpu.reciprocal %135 {approx = true} : vector<16x1xf32> -> vector<16x1xf32>
    %137 = vector.broadcast %136 : vector<16x1xf32> to vector<16x16xf32>
    %138 = arith.mulf %133, %137 : vector<16x16xf32>
    %139 = arith.truncf %138 : vector<16x16xf32> to vector<16x16xbf16>
    %140 = vector.extract_strided_slice %64 {offsets = [0, 48], sizes = [16, 16], strides = [1, 1]} : vector<16x64xbf16> to vector<16x16xbf16>
    %cst_48 = arith.constant dense<0.000000e+00> : vector<16x16xf32>
    %141 = tpu.matmul %139, %140, %cst_48 {dimension_numbers = #tpu.dot_dimension_numbers<[1], [0], [0], [1], [0, 0, 1, 1], [], []>} : vector<16x16xbf16>, vector<16x16xbf16>, vector<16x16xf32> -> vector<16x16xf32>
    %142 = tpu.concatenate %84, %103, %122, %141 in 1 : vector<16x16xf32>, vector<16x16xf32>, vector<16x16xf32>, vector<16x16xf32> -> vector<16x64xf32>
    %143 = arith.truncf %142 : vector<16x64xf32> to vector<16x64xbf16>
    %c0_49 = arith.constant 0 : index
    %c0_50 = arith.constant 0 : index
    %c0_51 = arith.constant 0 : index
    %144 = vector.load %arg13[%c0_49, %c0_50, %c0_51] : memref<1x64x64xbf16, #tpu.memory_space<vmem>>, vector<1x64x64xbf16>
    %145 = vector.shape_cast %144 : vector<1x64x64xbf16> to vector<64x64xbf16>
    %cst_52 = arith.constant dense<0.000000e+00> : vector<16x64xf32>
    %146 = tpu.matmul %143, %145, %cst_52 {dimension_numbers = #tpu.dot_dimension_numbers<[1], [0], [0], [1], [0, 0, 1, 1], [], []>} : vector<16x64xbf16>, vector<64x64xbf16>, vector<16x64xf32> -> vector<16x64xf32>
    %147 = arith.mulf %15, %146 : vector<16x64xf32>
    %148 = arith.addf %3, %147 : vector<16x64xf32>
    %c0_53 = arith.constant 0 : index
    %c0_54 = arith.constant 0 : index
    %c0_55 = arith.constant 0 : index
    %149 = vector.load %arg9[%c0_53, %c0_54, %c0_55] : memref<1x1x64xf32, #tpu.memory_space<vmem>>, vector<1x1x64xf32>
    %150 = vector.shape_cast %149 : vector<1x1x64xf32> to vector<1x64xf32>
    %cst_56 = arith.constant dense<0.000000e+00> : vector<16xf32>
    %151 = vector.multi_reduction <add>, %148, %cst_56 [1] : vector<16x64xf32> to vector<16xf32>
    %152 = vector.shape_cast %151 : vector<16xf32> to vector<16x1xf32>
    %cst_57 = arith.constant 6.400000e+01 : f32
    %153 = vector.broadcast %cst_57 : f32 to vector<16x1xf32>
    %154 = arith.divf %152, %153 : vector<16x1xf32>
    %155 = vector.broadcast %154 : vector<16x1xf32> to vector<16x64xf32>
    %156 = arith.subf %148, %155 : vector<16x64xf32>
    %157 = arith.mulf %156, %156 : vector<16x64xf32>
    %cst_58 = arith.constant dense<0.000000e+00> : vector<16xf32>
    %158 = vector.multi_reduction <add>, %157, %cst_58 [1] : vector<16x64xf32> to vector<16xf32>
    %159 = vector.shape_cast %158 : vector<16xf32> to vector<16x1xf32>
    %cst_59 = arith.constant 6.400000e+01 : f32
    %160 = vector.broadcast %cst_59 : f32 to vector<16x1xf32>
    %161 = arith.divf %159, %160 : vector<16x1xf32>
    %162 = vector.broadcast %154 : vector<16x1xf32> to vector<16x64xf32>
    %163 = arith.subf %148, %162 : vector<16x64xf32>
    %cst_60 = arith.constant 9.99999974E-6 : f32
    %164 = vector.broadcast %cst_60 : f32 to vector<16x1xf32>
    %165 = arith.addf %161, %164 : vector<16x1xf32>
    %166 = math.rsqrt %165 : vector<16x1xf32>
    %167 = vector.broadcast %166 : vector<16x1xf32> to vector<16x64xf32>
    %168 = arith.mulf %163, %167 : vector<16x64xf32>
    %169 = vector.broadcast %150 : vector<1x64xf32> to vector<16x64xf32>
    %170 = arith.mulf %168, %169 : vector<16x64xf32>
    %cst_61 = arith.constant 1.000000e+00 : f32
    %171 = vector.broadcast %cst_61 : f32 to vector<16x64xf32>
    %172 = arith.addf %171, %17 : vector<16x64xf32>
    %173 = arith.mulf %170, %172 : vector<16x64xf32>
    %174 = arith.addf %173, %16 : vector<16x64xf32>
    %175 = arith.truncf %174 : vector<16x64xf32> to vector<16x64xbf16>
    %c0_62 = arith.constant 0 : index
    %c0_63 = arith.constant 0 : index
    %c0_64 = arith.constant 0 : index
    %176 = vector.load %arg14[%c0_62, %c0_63, %c0_64] : memref<1x64x256xbf16, #tpu.memory_space<vmem>>, vector<1x64x256xbf16>
    %177 = vector.shape_cast %176 : vector<1x64x256xbf16> to vector<64x256xbf16>
    %cst_65 = arith.constant dense<0.000000e+00> : vector<16x256xf32>
    %178 = tpu.matmul %175, %177, %cst_65 {dimension_numbers = #tpu.dot_dimension_numbers<[1], [0], [0], [1], [0, 0, 1, 1], [], []>} : vector<16x64xbf16>, vector<64x256xbf16>, vector<16x256xf32> -> vector<16x256xf32>
    %c0_66 = arith.constant 0 : index
    %c0_67 = arith.constant 0 : index
    %c0_68 = arith.constant 0 : index
    %179 = vector.load %arg15[%c0_66, %c0_67, %c0_68] : memref<1x1x256xf32, #tpu.memory_space<vmem>>, vector<1x1x256xf32>
    %180 = vector.shape_cast %179 : vector<1x1x256xf32> to vector<1x256xf32>
    %181 = vector.broadcast %180 : vector<1x256xf32> to vector<16x256xf32>
    %182 = arith.addf %178, %181 : vector<16x256xf32>
    %cst_69 = arith.constant 5.000000e-01 : f32
    %183 = vector.broadcast %cst_69 : f32 to vector<16x256xf32>
    %184 = arith.mulf %183, %182 : vector<16x256xf32>
    %cst_70 = arith.constant 4.471500e-02 : f32
    %185 = vector.broadcast %cst_70 : f32 to vector<16x256xf32>
    %186 = arith.mulf %185, %182 : vector<16x256xf32>
    %187 = arith.mulf %186, %182 : vector<16x256xf32>
    %188 = arith.mulf %187, %182 : vector<16x256xf32>
    %189 = arith.addf %182, %188 : vector<16x256xf32>
    %cst_71 = arith.constant 0.797884583 : f32
    %190 = vector.broadcast %cst_71 : f32 to vector<16x256xf32>
    %191 = arith.mulf %190, %189 : vector<16x256xf32>
    %192 = math.tanh %191 : vector<16x256xf32>
    %cst_72 = arith.constant 1.000000e+00 : f32
    %193 = vector.broadcast %cst_72 : f32 to vector<16x256xf32>
    %194 = arith.addf %193, %192 : vector<16x256xf32>
    %195 = arith.mulf %184, %194 : vector<16x256xf32>
    %196 = arith.truncf %195 : vector<16x256xf32> to vector<16x256xbf16>
    %c0_73 = arith.constant 0 : index
    %c0_74 = arith.constant 0 : index
    %c0_75 = arith.constant 0 : index
    %197 = vector.load %arg16[%c0_73, %c0_74, %c0_75] : memref<1x256x64xbf16, #tpu.memory_space<vmem>>, vector<1x256x64xbf16>
    %198 = vector.shape_cast %197 : vector<1x256x64xbf16> to vector<256x64xbf16>
    %cst_76 = arith.constant dense<0.000000e+00> : vector<16x64xf32>
    %199 = tpu.matmul %196, %198, %cst_76 {dimension_numbers = #tpu.dot_dimension_numbers<[1], [0], [0], [1], [0, 0, 1, 1], [], []>} : vector<16x256xbf16>, vector<256x64xbf16>, vector<16x64xf32> -> vector<16x64xf32>
    %c0_77 = arith.constant 0 : index
    %c0_78 = arith.constant 0 : index
    %c0_79 = arith.constant 0 : index
    %200 = vector.load %arg17[%c0_77, %c0_78, %c0_79] : memref<1x1x64xf32, #tpu.memory_space<vmem>>, vector<1x1x64xf32>
    %201 = vector.shape_cast %200 : vector<1x1x64xf32> to vector<1x64xf32>
    %202 = vector.broadcast %201 : vector<1x64xf32> to vector<16x64xf32>
    %203 = arith.addf %199, %202 : vector<16x64xf32>
    %204 = arith.mulf %18, %203 : vector<16x64xf32>
    %205 = arith.addf %148, %204 : vector<16x64xf32>
    %c0_80 = arith.constant 0 : index
    %c0_81 = arith.constant 0 : index
    %206 = vector.load %arg24[%c0_80, %c0_81] : memref<16x64xf32, #tpu.memory_space<vmem>>, vector<16x64xf32>
    tpu.vector_store %arg24[%c0_80, %c0_81], %205 {strides = array<i32>} : memref<16x64xf32, #tpu.memory_space<vmem>>, vector<16x64xf32>,
    %c1_i32 = arith.constant 1 : i32
    %207 = arith.cmpi eq, %arg0, %c1_i32 : i32
    %208 = arith.extui %207 : i1 to i32
    %c0_i32_82 = arith.constant 0 : i32
    %209 = arith.cmpi ne, %208, %c0_i32_82 : i32
    scf.if %209 {
      %c0_83 = arith.constant 0 : index
      %c0_84 = arith.constant 0 : index
      %210 = vector.load %arg19[%c0_83, %c0_84] : memref<32x128xbf16, #tpu.memory_space<vmem>>, vector<32x128xbf16>
      %cst_85 = arith.constant dense<0.000000e+00> : vector<16x128xf32>
      %211 = tpu.matmul %5, %210, %cst_85 {dimension_numbers = #tpu.dot_dimension_numbers<[1], [0], [0], [1], [0, 0, 1, 1], [], []>} : vector<16x32xbf16>, vector<32x128xbf16>, vector<16x128xf32> -> vector<16x128xf32>
      %c0_86 = arith.constant 0 : index
      %c0_87 = arith.constant 0 : index
      %212 = vector.load %arg20[%c0_86, %c0_87] : memref<1x128xf32, #tpu.memory_space<vmem>>, vector<1x128xf32>
      %213 = vector.broadcast %212 : vector<1x128xf32> to vector<16x128xf32>
      %214 = arith.addf %211, %213 : vector<16x128xf32>
      %c0_88 = arith.constant 0 : index
      %c0_89 = arith.constant 0 : index
      %215 = vector.load %arg18[%c0_88, %c0_89] : memref<1x64xf32, #tpu.memory_space<vmem>>, vector<1x64xf32>
      %216 = vector.extract_strided_slice %214 {offsets = [0, 0], sizes = [16, 64], strides = [1, 1]} : vector<16x128xf32> to vector<16x64xf32>
      %217 = vector.extract_strided_slice %214 {offsets = [0, 64], sizes = [16, 64], strides = [1, 1]} : vector<16x128xf32> to vector<16x64xf32>
      %cst_90 = arith.constant dense<0.000000e+00> : vector<16xf32>
      %218 = vector.multi_reduction <add>, %205, %cst_90 [1] : vector<16x64xf32> to vector<16xf32>
      %219 = vector.shape_cast %218 : vector<16xf32> to vector<16x1xf32>
      %cst_91 = arith.constant 6.400000e+01 : f32
      %220 = vector.broadcast %cst_91 : f32 to vector<16x1xf32>
      %221 = arith.divf %219, %220 : vector<16x1xf32>
      %222 = vector.broadcast %221 : vector<16x1xf32> to vector<16x64xf32>
      %223 = arith.subf %205, %222 : vector<16x64xf32>
      %224 = arith.mulf %223, %223 : vector<16x64xf32>
      %cst_92 = arith.constant dense<0.000000e+00> : vector<16xf32>
      %225 = vector.multi_reduction <add>, %224, %cst_92 [1] : vector<16x64xf32> to vector<16xf32>
      %226 = vector.shape_cast %225 : vector<16xf32> to vector<16x1xf32>
      %cst_93 = arith.constant 6.400000e+01 : f32
      %227 = vector.broadcast %cst_93 : f32 to vector<16x1xf32>
      %228 = arith.divf %226, %227 : vector<16x1xf32>
      %229 = vector.broadcast %221 : vector<16x1xf32> to vector<16x64xf32>
      %230 = arith.subf %205, %229 : vector<16x64xf32>
      %cst_94 = arith.constant 9.99999974E-6 : f32
      %231 = vector.broadcast %cst_94 : f32 to vector<16x1xf32>
      %232 = arith.addf %228, %231 : vector<16x1xf32>
      %233 = math.rsqrt %232 : vector<16x1xf32>
      %234 = vector.broadcast %233 : vector<16x1xf32> to vector<16x64xf32>
      %235 = arith.mulf %230, %234 : vector<16x64xf32>
      %236 = vector.broadcast %215 : vector<1x64xf32> to vector<16x64xf32>
      %237 = arith.mulf %235, %236 : vector<16x64xf32>
      %cst_95 = arith.constant 1.000000e+00 : f32
      %238 = vector.broadcast %cst_95 : f32 to vector<16x64xf32>
      %239 = arith.addf %238, %217 : vector<16x64xf32>
      %240 = arith.mulf %237, %239 : vector<16x64xf32>
      %241 = arith.addf %240, %216 : vector<16x64xf32>
      %242 = arith.truncf %241 : vector<16x64xf32> to vector<16x64xbf16>
      %c0_96 = arith.constant 0 : index
      %c0_97 = arith.constant 0 : index
      %243 = vector.load %arg21[%c0_96, %c0_97] : memref<64x128xbf16, #tpu.memory_space<vmem>>, vector<64x128xbf16>
      %cst_98 = arith.constant dense<0.000000e+00> : vector<16x128xf32>
      %244 = tpu.matmul %242, %243, %cst_98 {dimension_numbers = #tpu.dot_dimension_numbers<[1], [0], [0], [1], [0, 0, 1, 1], [], []>} : vector<16x64xbf16>, vector<64x128xbf16>, vector<16x128xf32> -> vector<16x128xf32>
      %c0_99 = arith.constant 0 : index
      %c0_100 = arith.constant 0 : index
      %245 = vector.load %arg22[%c0_99, %c0_100] : memref<1x128xf32, #tpu.memory_space<vmem>>, vector<1x128xf32>
      %246 = vector.broadcast %245 : vector<1x128xf32> to vector<16x128xf32>
      %247 = arith.addf %244, %246 : vector<16x128xf32>
      %c0_101 = arith.constant 0 : index
      %c0_102 = arith.constant 0 : index
      %248 = vector.load %arg23[%c0_101, %c0_102] : memref<16x128xf32, #tpu.memory_space<vmem>>, vector<16x128xf32>
      tpu.vector_store %arg23[%c0_101, %c0_102], %247 {strides = array<i32>} : memref<16x128xf32, #tpu.memory_space<vmem>>, vector<16x128xf32>,
    } else {
    }
    return
  }
  func.func @transform_0(%arg0: i32) -> (i32, i32) {
    %c0_i32 = arith.constant 0 : i32
    %c0_i32_0 = arith.constant 0 : i32
    %c0_i32_1 = arith.constant 0 : i32
    return %c0_i32, %c0_i32_0 : i32, i32
  }
  func.func @transform_1(%arg0: i32) -> (i32, i32) {
    %c0_i32 = arith.constant 0 : i32
    %c0_i32_0 = arith.constant 0 : i32
    %c0_i32_1 = arith.constant 0 : i32
    return %c0_i32, %c0_i32_0 : i32, i32
  }
  func.func @transform_2(%arg0: i32) -> (i32, i32) {
    %c0_i32 = arith.constant 0 : i32
    %c0_i32_0 = arith.constant 0 : i32
    %c0_i32_1 = arith.constant 0 : i32
    return %c0_i32, %c0_i32_0 : i32, i32
  }
  func.func @transform_3(%arg0: i32) -> (i32, i32) {
    %c0_i32 = arith.constant 0 : i32
    %c0_i32_0 = arith.constant 0 : i32
    %c0_i32_1 = arith.constant 0 : i32
    return %c0_i32, %c0_i32_0 : i32, i32
  }
  func.func @transform_4(%arg0: i32) -> (i32, i32) {
    %c0_i32 = arith.constant 0 : i32
    %c0_i32_0 = arith.constant 0 : i32
    %c0_i32_1 = arith.constant 0 : i32
    return %c0_i32, %c0_i32_0 : i32, i32
  }
  func.func @transform_5(%arg0: i32) -> (i32, i32) {
    %c0_i32 = arith.constant 0 : i32
    %c0_i32_0 = arith.constant 0 : i32
    %c0_i32_1 = arith.constant 0 : i32
    return %c0_i32, %c0_i32_0 : i32, i32
  }
  func.func @transform_6(%arg0: i32) -> (i32, i32) {
    %c0_i32 = arith.constant 0 : i32
    %c0_i32_0 = arith.constant 0 : i32
    %c0_i32_1 = arith.constant 0 : i32
    return %c0_i32, %c0_i32_0 : i32, i32
  }
  func.func @transform_7(%arg0: i32) -> (i32, i32, i32) {
    %c0_i32 = arith.constant 0 : i32
    %c0_i32_0 = arith.constant 0 : i32
    %c0_i32_1 = arith.constant 0 : i32
    return %arg0, %c0_i32, %c0_i32_0 : i32, i32, i32
  }
  func.func @transform_8(%arg0: i32) -> (i32, i32, i32) {
    %c0_i32 = arith.constant 0 : i32
    %c0_i32_0 = arith.constant 0 : i32
    %c0_i32_1 = arith.constant 0 : i32
    return %arg0, %c0_i32, %c0_i32_0 : i32, i32, i32
  }
  func.func @transform_9(%arg0: i32) -> (i32, i32, i32) {
    %c0_i32 = arith.constant 0 : i32
    %c0_i32_0 = arith.constant 0 : i32
    %c0_i32_1 = arith.constant 0 : i32
    return %arg0, %c0_i32, %c0_i32_0 : i32, i32, i32
  }
  func.func @transform_10(%arg0: i32) -> (i32, i32, i32) {
    %c0_i32 = arith.constant 0 : i32
    %c0_i32_0 = arith.constant 0 : i32
    %c0_i32_1 = arith.constant 0 : i32
    return %arg0, %c0_i32, %c0_i32_0 : i32, i32, i32
  }
  func.func @transform_11(%arg0: i32) -> (i32, i32, i32) {
    %c0_i32 = arith.constant 0 : i32
    %c0_i32_0 = arith.constant 0 : i32
    %c0_i32_1 = arith.constant 0 : i32
    return %arg0, %c0_i32, %c0_i32_0 : i32, i32, i32
  }
  func.func @transform_12(%arg0: i32) -> (i32, i32, i32) {
    %c0_i32 = arith.constant 0 : i32
    %c0_i32_0 = arith.constant 0 : i32
    %c0_i32_1 = arith.constant 0 : i32
    return %arg0, %c0_i32, %c0_i32_0 : i32, i32, i32
  }
  func.func @transform_13(%arg0: i32) -> (i32, i32, i32) {
    %c0_i32 = arith.constant 0 : i32
    %c0_i32_0 = arith.constant 0 : i32
    %c0_i32_1 = arith.constant 0 : i32
    return %arg0, %c0_i32, %c0_i32_0 : i32, i32, i32
  }
  func.func @transform_14(%arg0: i32) -> (i32, i32, i32) {
    %c0_i32 = arith.constant 0 : i32
    %c0_i32_0 = arith.constant 0 : i32
    %c0_i32_1 = arith.constant 0 : i32
    return %arg0, %c0_i32, %c0_i32_0 : i32, i32, i32
  }
  func.func @transform_15(%arg0: i32) -> (i32, i32, i32) {
    %c0_i32 = arith.constant 0 : i32
    %c0_i32_0 = arith.constant 0 : i32
    %c0_i32_1 = arith.constant 0 : i32
    return %arg0, %c0_i32, %c0_i32_0 : i32, i32, i32
  }
  func.func @transform_16(%arg0: i32) -> (i32, i32, i32) {
    %c0_i32 = arith.constant 0 : i32
    %c0_i32_0 = arith.constant 0 : i32
    %c0_i32_1 = arith.constant 0 : i32
    return %arg0, %c0_i32, %c0_i32_0 : i32, i32, i32
  }
  func.func @transform_17(%arg0: i32) -> (i32, i32) {
    %c0_i32 = arith.constant 0 : i32
    %c0_i32_0 = arith.constant 0 : i32
    %c0_i32_1 = arith.constant 0 : i32
    return %c0_i32, %c0_i32_0 : i32, i32
  }
  func.func @transform_18(%arg0: i32) -> (i32, i32) {
    %c0_i32 = arith.constant 0 : i32
    %c0_i32_0 = arith.constant 0 : i32
    %c0_i32_1 = arith.constant 0 : i32
    return %c0_i32, %c0_i32_0 : i32, i32
  }
  func.func @transform_19(%arg0: i32) -> (i32, i32) {
    %c0_i32 = arith.constant 0 : i32
    %c0_i32_0 = arith.constant 0 : i32
    %c0_i32_1 = arith.constant 0 : i32
    return %c0_i32, %c0_i32_0 : i32, i32
  }
  func.func @transform_20(%arg0: i32) -> (i32, i32) {
    %c0_i32 = arith.constant 0 : i32
    %c0_i32_0 = arith.constant 0 : i32
    %c0_i32_1 = arith.constant 0 : i32
    return %c0_i32, %c0_i32_0 : i32, i32
  }
  func.func @transform_21(%arg0: i32) -> (i32, i32) {
    %c0_i32 = arith.constant 0 : i32
    %c0_i32_0 = arith.constant 0 : i32
    %c0_i32_1 = arith.constant 0 : i32
    return %c0_i32, %c0_i32_0 : i32, i32
  }
  func.func @transform_22(%arg0: i32) -> (i32, i32) {
    %c0_i32 = arith.constant 0 : i32
    %c0_i32_0 = arith.constant 0 : i32
    %c0_i32_1 = arith.constant 0 : i32
    return %c0_i32, %c0_i32_0 : i32, i32
  }
}

</mosaic_0001>

<bundles_post_ra>
// kernel: decoder_forward.1
= control target key start
LH: loop header
LB: loop body
LE: loop exit
PB: predicated region body
PF: predicated region fallthrough
CT: control target
= control target key end

     0   :  { %s5064_s0 = inlined_call_operand.vmem [shape: f32[16,32], index: 0, kind: input, shape index: {}]   ;;  %s5065_s1 = inlined_call_operand.vmem [shape: f32[16,32], index: 1, kind: input, shape index: {}]   ;;  %s5066_s2 = inlined_call_operand.hbm [shape: f32[16,64], index: 2, kind: input, shape index: {}]   ;;  %s5067_s3 = inlined_call_operand.hbm [shape: f32[16,64], index: 3, kind: input, shape index: {}]   ;;  %s5068_s4 = inlined_call_operand.hbm [shape: f32[16,16], index: 4, kind: input, shape index: {}]   ;;  %s5069_s5 = inlined_call_operand.hbm [shape: bf16[32,64], index: 5, kind: input, shape index: {}]   ;;  %s5070_s6 = inlined_call_operand.hbm [shape: f32[1,64], index: 6, kind: input, shape index: {}]   ;;  %s5071_s7 = inlined_call_operand.vmem [shape: f32[2,1,64], index: 7, kind: input, shape index: {}]   ;;  %s5072_s8 = inlined_call_operand.hbm [shape: f32[2,1,64], index: 8, kind: input, shape index: {}]   ;;  %s5073_s9 = inlined_call_operand.vmem [shape: bf16[2,32,384], index: 9, kind: input, shape index: {}]   ;;  %s5074_s10 = inlined_call_operand.hbm [shape: f32[2,1,384], index: 10, kind: input, shape index: {}]   ;;  %s5075_s11 = inlined_call_operand.vmem [shape: bf16[2,64,320], index: 11, kind: input, shape index: {}]   ;;  %s5076_s12 = inlined_call_operand.vmem [shape: bf16[2,64,64], index: 12, kind: input, shape index: {}]   ;;  %s5077_s13 = inlined_call_operand.vmem [shape: bf16[2,64,256], index: 13, kind: input, shape index: {}]   ;;  %s5078_s14 = inlined_call_operand.hbm [shape: f32[2,1,256], index: 14, kind: input, shape index: {}]   ;;  %s5079_s15 = inlined_call_operand.vmem [shape: bf16[2,256,64], index: 15, kind: input, shape index: {}]   ;;  %s5080_s16 = inlined_call_operand.hbm [shape: f32[2,1,64], index: 16, kind: input, shape index: {}]   ;;  %s5081_s17 = inlined_call_operand.hbm [shape: f32[1,64], index: 17, kind: input, shape index: {}]   ;;  %s5082_s18 = inlined_call_operand.hbm [shape: bf16[32,128], index: 18, kind: input, shape index: {}]   ;;  %s5083_s19 = inlined_call_operand.hbm [shape: f32[1,128], index: 19, kind: input, shape index: {}]   ;;  %s5084_s20 = inlined_call_operand.hbm [shape: bf16[64,128], index: 20, kind: input, shape index: {}]   ;;  %s5085_s21 = inlined_call_operand.hbm [shape: f32[1,128], index: 21, kind: input, shape index: {}]   ;;  %s5086_s22 = inlined_call_operand.vmem [shape: f32[16,128], index: 22, kind: output, shape index: {}]  }
   0x1   :  { %5126 = sst [smem:[#allocation38_spill]] %s5064_s0 }
   0x2   :  { %5127 = sst [smem:[#allocation39_spill]] %s5065_s1 }
   0x3   :  { %5128 = sst [smem:[#allocation40_spill]] %s5066_s2 }
   0x4   :  { %5129 = sst [smem:[#allocation41_spill]] %s5067_s3 }
   0x5   :  { %5130 = sst [smem:[#allocation42_spill]] %s5068_s4 }
   0x6   :  { %5131 = sst [smem:[#allocation43_spill]] %s5069_s5 }
   0x7   :  { %5132 = sst [smem:[#allocation44_spill]] %s5070_s6 }
   0x8   :  { %5133 = sst [smem:[#allocation45_spill]] %s5071_s7 }
   0x9   :  { %5134 = sst [smem:[#allocation46_spill]] %s5072_s8 }
   0xa   :  { %5135 = sst [smem:[#allocation47_spill]] %s5073_s9 }
   0xb   :  { %5136 = sst [smem:[#allocation48_spill]] %s5074_s10 }
   0xc   :  { %5137 = sst [smem:[#allocation49_spill]] %s5075_s11 }
   0xd   :  { %5138 = sst [smem:[#allocation50_spill]] %s5076_s12 }
   0xe   :  { %5139 = sst [smem:[#allocation51_spill]] %s5077_s13 }
   0xf   :  { %5140 = sst [smem:[#allocation52_spill]] %s5078_s14 }
  0x10   :  { %5141 = sst [smem:[#allocation53_spill]] %s5079_s15 }
  0x11   :  { %5142 = sst [smem:[#allocation54_spill]] %s5080_s16 }
  0x12   :  { %5143 = sst [smem:[#allocation55_spill]] %s5081_s17 }
  0x13   :  { %5144 = sst [smem:[#allocation56_spill]] %s5082_s18 }
  0x14   :  { %5145 = sst [smem:[#allocation57_spill]] %s5083_s19 }
  0x15   :  { %5146 = sst [smem:[#allocation58_spill]] %s5086_s22 }
  0x16   :  { %27 = vsyncpa [#allocation4], 0 }
  0x17   :  { %28 = vsyncpa [#allocation6], 0 }
  0x18   :  { %29 = vsyncpa [#allocation9], 0 }
  0x19   :  { %30 = vsyncpa [#allocation12], 0 }
  0x1a   :  { %32 = vsyncpa [#allocation12 + $0x1], 0 }
  0x1b   :  { %33 = vsyncpa [#allocation15], 0 }
  0x1c   :  { %35 = vsyncpa [#allocation15 + $0x1], 0 }
  0x1d   :  { %36 = vsyncpa [#allocation18], 0 }
  0x1e   :  { %37 = vsyncpa [#allocation21], 0 }
  0x1f   :  { %38 = vsyncpa [#allocation24], 0  ;;  %s4226_s3 = smov 0   ;;  %s4228_s28 = smov 0  }
  0x20   :  { %s4230_s29 = smov 0   ;;  %s4232_s30 = smov 0  }
  0x21 LB: > { %5147 = sst [smem:[#allocation33_spill]] %s4072_s29  ;;  %s4247_s4 = sadd.s32 4294967295, %s4076_s30   ;;  %s4076_s30 = sphi %s4232_s30, %s5213_s30   ;;  %s4072_s29 = sphi %s4230_s29, %s5215_s29   ;;  %s4068_s28 = sphi %s4228_s28, %s5217_s28   ;;  %s4064_s3 = sphi %s4226_s3, %s5216_s3  }
  0x22   : > { %p3010_p0 = scmp.ge.s32.totalorder %s4076_s30, 1  ;;  %p5099_p1 = scmp.eq.s32.totalorder %s4247_s4, 0 }
  0x23   : > { %p582_p2 = scmp.lt.s32.totalorder %s4076_s30, 3  ;;  %s4078_s23 = smov [#allocation5]  }
  0x24   : > { %s613_s1 = sshll.u32 %s4078_s23, 4  ;;  %s4079_s5 = smov [#allocation8]   ;;  %s4257_s1 = int_to_ptr.vmem [resolvable:$true] %s613_s1 }
  0x25   : > { %p4253_p4 = pnand %p3010_p0, %p582_p2  ;;  %s639_s24 = sshll.u32 %s4079_s5, 4  ;;  %s4267_s24 = int_to_ptr.vmem [resolvable:$true] %s639_s24 }
  0x26   : > { %s4080_s25 = smov [#allocation17]   ;;  %s5151_s23 = sld [smem:[#allocation41_spill]] }
  0x27   : > { %s5148_s0 = scalar_select %p4253_p4, 1, 0 }
  0x28   : > { %p3357_p5 = pneg %p4253_p4  ;;  %s4269_s26 = sshll.u32 %s4080_s25, 4  ;;  %s665_s26 = int_to_ptr.vmem [resolvable:$true] %s4269_s26 }
  0x29   : > { %5149 = sst [smem:[#allocation34_spill]] %s5148_s0 }
  0x2a   : > { %p4263_p6 = pnand %p3357_p5, %p5099_p1 }
  0x2c   : > { %s5150_s6 = scalar_select %p4263_p6, 1, 0 }
  0x2d   : > { %s3614_s22 = scalar_lea.hbm %s5151_s23, 256  ;;  %p4279_p8 = pneg %p4263_p6 }
  0x2e   : > { %p3615_p7 = scmp.ne.s32.totalorder %s5151_s23, %s3614_s22  ;;  %p3621_p11 = scmp.lt.u32.totalorder %s3614_s22, %s5151_s23 }
  0x2f   : > { %s5152_s5 = scalar_select %p4279_p8, 1, 0 }
  0x30   : > { %p3617_p9 = pnand %p4279_p8, %p3615_p7 }
  0x32   : > { %p3618_p10 = pneg %p3617_p9 }
  0x34   : > { %p3623_p12 = pnand %p3621_p11, %p3618_p10 }
  0x36   : > { %3626 = shalt.err (!%p3623_p12)
}
  0x37   : > { %s3627_s13 = scalar_lea.vmem %s4257_s1, 256  ;;  %p3635_p5 = scmp.lt.s32.totalorder %s4257_s1, %s4257_s1 }
  0x38   : > { %p3628_p13 = scmp.ne.s32.totalorder %s4257_s1, %s3627_s13  ;;  %p3636_p3 = scmp.lt.s32.totalorder %s3627_s13, %s3627_s13 }
  0x3a   : > { %p3630_p0 = pnand %p3628_p13, %p4279_p8  ;;  %p3637_p7 = por %p3636_p3, %p3635_p5 }
  0x3c   : > { %p3631_p2 = pneg %p3630_p0 }
  0x3e   : > { %p3638_p9 = pnand %p3637_p7, %p3631_p2 }
  0x40   : > { %3641 = shalt.err (!%p3638_p9)
}
  0x41   : > { %s5097_s15 = smov 128   ;;  %s5105_s11 = smov 8  }
  0x42   : > { %3363 = dma.hbm_to_vmem [thread:$0]  (!%p4263_p6), %s5151_s23, 256, %s4257_s1, [#allocation6], %s5097_s15, %s5097_s15, %s5105_s11  }
  0x43   : > { %s5153_s12 = sld [smem:[#allocation43_spill]] }
  0x49   : > { %s3642_s13 = scalar_lea.hbm %s5153_s12, 256 }
  0x4a   : > { %p3643_p3 = scmp.ne.s32.totalorder %s5153_s12, %s3642_s13  ;;  %p3649_p12 = scmp.lt.u32.totalorder %s3642_s13, %s5153_s12 }
  0x4c   : > { %p3645_p10 = pnand %p3643_p3, %p4279_p8 }
  0x4e   : > { %p3646_p11 = pneg %p3645_p10 }
  0x50   : > { %p3651_p13 = pnand %p3649_p12, %p3646_p11 }
  0x52   : > { %3654 = shalt.err (!%p3651_p13)
}
  0x53   : > { %s3655_s1 = scalar_lea.vmem %s4267_s24, 256  ;;  %p3663_p7 = scmp.lt.s32.totalorder %s4267_s24, %s4267_s24 }
  0x54   : > { %p3656_p0 = scmp.ne.s32.totalorder %s4267_s24, %s3655_s1  ;;  %p3664_p9 = scmp.lt.s32.totalorder %s3655_s1, %s3655_s1 }
  0x56   : > { %p3658_p2 = pnand %p3656_p0, %p4279_p8  ;;  %p3665_p3 = por %p3664_p9, %p3663_p7 }
  0x58   : > { %p3659_p5 = pneg %p3658_p2 }
  0x5a   : > { %p3666_p10 = pnand %p3665_p3, %p3659_p5 }
  0x5c   : > { %3669 = shalt.err (!%p3666_p10)
}
  0x5d   : > { %s5101_s7 = smov 64   ;;  %s5103_s9 = smov 4  }
  0x5e   : > { %3369 = dma.hbm_to_vmem [thread:$0]  (!%p4263_p6), %s5153_s12, 256, %s4267_s24, [#allocation9], %s5101_s7, %s5101_s7, %s5103_s9  }
  0x5f   : > { %s5154_s17 = sld [smem:[#allocation55_spill]] }
  0x65   : > { %s3670_s27 = scalar_lea.hbm %s5154_s17, 16 }
  0x66   : > { %p3671_p11 = scmp.ne.s32.totalorder %s5154_s17, %s3670_s27  ;;  %p3677_p0 = scmp.lt.u32.totalorder %s3670_s27, %s5154_s17 }
  0x68   : > { %p3673_p12 = pnand %p3671_p11, %p4279_p8 }
  0x6a   : > { %p3674_p13 = pneg %p3673_p12 }
  0x6c   : > { %p3679_p2 = pnand %p3677_p0, %p3674_p13 }
  0x6e   : > { %3682 = shalt.err (!%p3679_p2)
}
  0x6f   : > { %s3683_s10 = scalar_lea.vmem %s665_s26, 16  ;;  %s3690_s24 = scalar_lea.vmem %s665_s26, 32 }
  0x70   : > { %p3684_p5 = scmp.ne.s32.totalorder %s665_s26, %s3683_s10  ;;  %p3691_p3 = scmp.lt.s32.totalorder %s665_s26, %s665_s26 }
  0x71   : > { %p3692_p10 = scmp.lt.s32.totalorder %s3690_s24, %s3683_s10 }
  0x72   : > { %p3686_p7 = pnand %p3684_p5, %p4279_p8 }
  0x73   : > { %p3693_p1 = por %p3692_p10, %p3691_p3 }
  0x74   : > { %p3687_p9 = pneg %p3686_p7 }
  0x76   : > { %p3694_p4 = pnand %p3693_p1, %p3687_p9 }
  0x78   : > { %3697 = shalt.err (!%p3694_p4)
}
  0x79   : > { %3375 = dma.hbm_to_vmem [thread:$0]  (!%p4263_p6), %s5154_s17, 16, %s665_s26, [#allocation18]  }
  0x7a   : > { %s4085_s15 = smov [#allocation20]   ;;  %s5155_s19 = sld [smem:[#allocation57_spill]] }
  0x7b   : > { %s688_s2 = sshll.u32 %s4085_s15, 4  ;;  %s689_s2 = int_to_ptr.vmem [resolvable:$true] %s688_s2 }
  0x80   : > { %s3698_s13 = scalar_lea.hbm %s5155_s19, 16 }
  0x81   : > { %p3699_p11 = scmp.ne.s32.totalorder %s5155_s19, %s3698_s13  ;;  %p3705_p12 = scmp.lt.u32.totalorder %s3698_s13, %s5155_s19 }
  0x83   : > { %p3701_p1 = pnand %p3699_p11, %p4279_p8 }
  0x85   : > { %p3702_p4 = pneg %p3701_p1 }
  0x87   : > { %p3707_p13 = pnand %p3705_p12, %p3702_p4 }
  0x89   : > { %3710 = shalt.err (!%p3707_p13)
}
  0x8a   : > { %s3711_s26 = scalar_lea.vmem %s689_s2, 16  ;;  %s3718_s0 = scalar_lea.vmem %s689_s2, 32 }
  0x8b   : > { %p3712_p0 = scmp.ne.s32.totalorder %s689_s2, %s3711_s26  ;;  %p3719_p7 = scmp.lt.s32.totalorder %s689_s2, %s689_s2 }
  0x8c   : > { %p3720_p9 = scmp.lt.s32.totalorder %s3718_s0, %s3711_s26 }
  0x8d   : > { %p3714_p2 = pnand %p3712_p0, %p4279_p8 }
  0x8e   : > { %p3721_p3 = por %p3720_p9, %p3719_p7 }
  0x8f   : > { %p3715_p5 = pneg %p3714_p2 }
  0x91   : > { %p3722_p10 = pnand %p3721_p3, %p3715_p5 }
  0x93   : > { %3725 = shalt.err (!%p3722_p10)
}
  0x94   : > { %3381 = dma.hbm_to_vmem [thread:$0]  (!%p4263_p6), %s5155_s19, 16, %s689_s2, [#allocation21]  }
  0x95   : > { %s4367_s15 = sadd.s32 1, %s4076_s30   ;;  %s224_s27 = sadd.s32 1, %s4072_s29 }
  0x96   : > { %5156 = sst [smem:[#allocation35_spill]] %s4367_s15  ;;  %s221_s25 = ssub.s32 %s4076_s30, %s4367_s15 }
  0x97   : > { %p231_p11 = scmp.ne.s32.totalorder %s4072_s29, %s4068_s28  ;;  %p222_p1 = scmp.eq.s32.totalorder %s221_s25, 0 }
  0x98   : > { %p232_p4 = scmp.eq.s32.totalorder %s4076_s30, 0  ;;  %p237_p12 = scmp.ne.s32.totalorder %s4068_s28, %s4064_s3 }
  0x99   : > { %p3411_p13 = scmp.lt.s32.totalorder %s4076_s30, 2  ;;  %p5158_p2 = scmp.eq.s32.totalorder %s4247_s4, 0 }
  0x9a   : > { %s4379_s13 = scalar_select %p222_p1, %s4072_s29, %s224_s27  }
  0x9b   : > { %p233_p0 = por %p232_p4, %p231_p11  ;;  %p4383_p5 = por %p5158_p2, %p237_p12 }
  0x9c   : > { %5157 = sst [smem:[#allocation36_spill]] %s4379_s13  ;;  %s5108_s2 = sand.u32 1, %s4076_s30  }
  0x9d   : > { %s5159_s1 = scalar_select %p4383_p5, 1, 0 }
  0x9e   : > { %s4389_s10 = sand.u32 1, %s4072_s29   ;;  %s3022_s24 = sshll.u32 %s4076_s30, 4 }
  0x9f   : > { %5160 = sst [smem:[#allocation37_spill]] %s5159_s1  ;;  %s732_s26 = scalar_lea.vmem [#allocation11], %s4389_s10 }
  0xa0   : > { %s739_s0 = sshll.u32 %s732_s26, 4  ;;  %s5161_s8 = sld [smem:[#allocation46_spill]]  ;;  %s4398_s0 = int_to_ptr.vmem [resolvable:$true] %s739_s0 }
  0xa1   : > { %p4400_p7 = pnand %p3411_p13, %p233_p0  ;;  %s5163_s16 = sld [smem:[#allocation54_spill]] }
  0xa2   : > { %s4412_s7 = scalar_lea.sflag [#allocation12], %s5108_s2 }
  0xa3   : > { %s5162_s27 = scalar_select %p4400_p7, 1, 0 }
  0xa4   : > { %p4418_p3 = pneg %p4400_p7 }
  0xa6   : > { %s4396_s3 = scalar_lea.hbm %s5161_s8, %s3022_s24 }
  0xa7   : > { %s4407_s26 = scalar_lea.hbm %s5163_s16, %s3022_s24  ;;  %s3726_s22 = scalar_lea.hbm %s4396_s3, 16 }
  0xa8   : > { %p3727_p9 = scmp.ne.s32.totalorder %s4396_s3, %s3726_s22  ;;  %s3731_s24 = scalar_lea.hbm %s5161_s8, 32 }
  0xa9   : > { %s5164_s12 = scalar_select %p4418_p3, 1, 0 }
  0xaa   : > { %p3729_p10 = pnand %p4418_p3, %p3727_p9  ;;  %p3732_p1 = scmp.lt.u32.totalorder %s4396_s3, %s5161_s8 }
  0xab   : > { %p3733_p4 = scmp.lt.u32.totalorder %s3731_s24, %s3726_s22  ;;  %p3735_p13 = scmp.lt.u32.totalorder %s3726_s22, %s4396_s3 }
  0xac   : > { %p3730_p11 = pneg %p3729_p10 }
  0xad   : > { %p3734_p12 = por %p3733_p4, %p3732_p1 }
  0xaf   : > { %p3736_p0 = por %p3735_p13, %p3734_p12 }
  0xb1   : > { %p3737_p2 = pnand %p3736_p0, %p3730_p11 }
  0xb3   : > { %3740 = shalt.err (!%p3737_p2)
}
  0xb4   : > { %s3741_s2 = scalar_lea.vmem %s4398_s0, 16  ;;  %s4086_s17 = smov [#allocation11]  }
  0xb5   : > { %p3742_p9 = scmp.ne.s32.totalorder %s4398_s0, %s3741_s2  ;;  %s3746_s9 = sshll.u32 %s4086_s17, 4  ;;  %s3747_s9 = int_to_ptr.vmem [resolvable:$false] %s3746_s9 }
  0xb6   : > { %s3748_s11 = scalar_lea.vmem %s3747_s9, 32  ;;  %p3749_p6 = scmp.lt.s32.totalorder %s4398_s0, %s3747_s9 }
  0xb7   : > { %p3744_p10 = pnand %p3742_p9, %p4418_p3  ;;  %p3750_p8 = scmp.lt.s32.totalorder %s3748_s11, %s3741_s2 }
  0xb9   : > { %p3745_p5 = pneg %p3744_p10  ;;  %p3751_p1 = por %p3750_p8, %p3749_p6 }
  0xbb   : > { %p3752_p4 = pnand %p3751_p1, %p3745_p5 }
  0xbd   : > { %3755 = shalt.err (!%p3752_p4)
}
  0xbe   : > { %3391 = dma.hbm_to_vmem [thread:$0]  (!%p4400_p7), %s4396_s3, 16, %s4398_s0, %s4412_s7  }
  0xbf   : > { %s3130_s22 = sshll.u32 %s4076_s30, 5  ;;  %s5165_s24 = sshll.u32 %s4389_s10, 1 }
  0xc0   : > { %s801_s25 = scalar_lea.vmem [#allocation14], %s5165_s24  ;;  %s5166_s14 = sld [smem:[#allocation52_spill]] }
  0xc1   : > { %s809_s17 = sshll.u32 %s801_s25, 4  ;;  %s5167_s11 = sand.u32 1, %s4076_s30   ;;  %s810_s17 = int_to_ptr.vmem [resolvable:$true] %s809_s17 }
  0xc2   : > { %s4452_s19 = scalar_lea.sflag [#allocation15], %s5167_s11 }
  0xc6   : > { %s4448_s2 = scalar_lea.hbm %s5166_s14, %s3130_s22  ;;  %s3761_s24 = scalar_lea.hbm %s5166_s14, 64 }
  0xc7   : > { %s3756_s23 = scalar_lea.hbm %s4448_s2, 32  ;;  %p3762_p11 = scmp.lt.u32.totalorder %s4448_s2, %s5166_s14 }
  0xc8   : > { %p3757_p6 = scmp.ne.s32.totalorder %s4448_s2, %s3756_s23  ;;  %p3763_p12 = scmp.lt.u32.totalorder %s3761_s24, %s3756_s23 }
  0xc9   : > { %p3765_p0 = scmp.lt.u32.totalorder %s3756_s23, %s4448_s2 }
  0xca   : > { %p3759_p8 = pnand %p3757_p6, %p4418_p3  ;;  %p3764_p13 = por %p3763_p12, %p3762_p11 }
  0xcc   : > { %p3760_p5 = pneg %p3759_p8  ;;  %p3766_p2 = por %p3765_p0, %p3764_p13 }
  0xce   : > { %p3767_p9 = pnand %p3766_p2, %p3760_p5 }
  0xd0   : > { %3770 = shalt.err (!%p3767_p9)
}
  0xd1   : > { %s3771_s25 = scalar_lea.vmem %s810_s17, 32  ;;  %s4087_s9 = smov [#allocation14]  }
  0xd2   : > { %p3772_p10 = scmp.ne.s32.totalorder %s810_s17, %s3771_s25  ;;  %s3776_s11 = sshll.u32 %s4087_s9, 4  ;;  %s3777_s11 = int_to_ptr.vmem [resolvable:$false] %s3776_s11 }
  0xd3   : > { %s3778_s0 = scalar_lea.vmem %s3777_s11, 64  ;;  %p3779_p6 = scmp.lt.s32.totalorder %s810_s17, %s3777_s11 }
  0xd4   : > { %p3774_p1 = pnand %p3772_p10, %p4418_p3  ;;  %p3780_p8 = scmp.lt.s32.totalorder %s3778_s0, %s3771_s25 }
  0xd6   : > { %p3775_p4 = pneg %p3774_p1  ;;  %p3781_p7 = por %p3780_p8, %p3779_p6 }
  0xd8   : > { %p3782_p11 = pnand %p3781_p7, %p3775_p4 }
  0xda   : > { %3785 = shalt.err (!%p3782_p11)
}
  0xdb   : > { %p5168_p12 = scmp.ne.s32.totalorder %s5162_s27, 0  ;;  %s4088_s23 = smov [#allocation3]  }
  0xdc   : > { %s600_s3 = sshll.u32 %s4088_s23, 4  ;;  %s4089_s24 = smov [#allocation7]   ;;  %s601_s3 = int_to_ptr.vmem [resolvable:$true] %s600_s3 }
  0xdd   : > { %3397 = dma.hbm_to_vmem [thread:$0]  (!%p5168_p12), %s4448_s2, 32, %s810_s17, %s4452_s19  }
  0xde   : > { %s626_s8 = sshll.u32 %s4089_s24, 4  ;;  %s5169_s11 = sld [smem:[#allocation40_spill]]  ;;  %s4472_s8 = int_to_ptr.vmem [resolvable:$true] %s626_s8 }
  0xdf   : > { %p5170_p5 = scmp.ne.s32.totalorder %s5152_s5, 0 }
  0xe4   : > { %s3786_s25 = scalar_lea.hbm %s5169_s11, 256 }
  0xe5   : > { %p3787_p7 = scmp.ne.s32.totalorder %s5169_s11, %s3786_s25  ;;  %p3793_p2 = scmp.lt.u32.totalorder %s3786_s25, %s5169_s11 }
  0xe7   : > { %p3789_p13 = pnand %p3787_p7, %p5170_p5 }
  0xe9   : > { %p3790_p0 = pneg %p3789_p13 }
  0xeb   : > { %p3795_p9 = pnand %p3793_p2, %p3790_p0 }
  0xed   : > { %3798 = shalt.err (!%p3795_p9)
}
  0xee   : > { %s3799_s2 = scalar_lea.vmem %s601_s3, 256  ;;  %p3807_p6 = scmp.lt.s32.totalorder %s601_s3, %s601_s3 }
  0xef   : > { %p3800_p10 = scmp.ne.s32.totalorder %s601_s3, %s3799_s2  ;;  %p3808_p8 = scmp.lt.s32.totalorder %s3799_s2, %s3799_s2 }
  0xf1   : > { %p3802_p1 = pnand %p3800_p10, %p5170_p5  ;;  %p3809_p11 = por %p3808_p8, %p3807_p6 }
  0xf3   : > { %p3803_p4 = pneg %p3802_p1 }
  0xf5   : > { %p3810_p12 = pnand %p3809_p11, %p3803_p4 }
  0xf7   : > { %3813 = shalt.err (!%p3810_p12)
}
  0xf8   : > { %p5171_p7 = scmp.ne.s32.totalorder %s5150_s6, 0  ;;  %s5172_s14 = smov 8  }
  0xf9   : > { %s5173_s23 = smov 128   ;;  %s5174_s25 = sld [smem:[#allocation42_spill]] }
  0xfa   : > { %3360 = dma.hbm_to_vmem [thread:$0]  (!%p5171_p7), %s5169_s11, 256, %s601_s3, [#allocation4], %s5173_s23, %s5173_s23, %s5172_s14  }
  0xff   : > { %s3814_s0 = scalar_lea.hbm %s5174_s25, 256 }
 0x100   : > { %p3815_p13 = scmp.ne.s32.totalorder %s5174_s25, %s3814_s0  ;;  %p3821_p2 = scmp.lt.u32.totalorder %s3814_s0, %s5174_s25 }
 0x102   : > { %p3817_p12 = pnand %p3815_p13, %p5170_p5 }
 0x104   : > { %p3818_p0 = pneg %p3817_p12 }
 0x106   : > { %p3823_p9 = pnand %p3821_p2, %p3818_p0 }
 0x108   : > { %3826 = shalt.err (!%p3823_p9)
}
 0x109   : > { %s3827_s3 = scalar_lea.vmem %s4472_s8, 256  ;;  %p3835_p6 = scmp.lt.s32.totalorder %s4472_s8, %s4472_s8 }
 0x10a   : > { %p3828_p10 = scmp.ne.s32.totalorder %s4472_s8, %s3827_s3  ;;  %p3836_p8 = scmp.lt.s32.totalorder %s3827_s3, %s3827_s3 }
 0x10c   : > { %p3830_p1 = pnand %p3828_p10, %p5170_p5  ;;  %p3837_p11 = por %p3836_p8, %p3835_p6 }
 0x10e   : > { %p3831_p4 = pneg %p3830_p1 }
 0x110   : > { %p3838_p13 = pnand %p3837_p11, %p3831_p4 }
 0x112   : > { %3841 = shalt.err (!%p3838_p13)
}
 0x113   : > { %3366 = dma.hbm_to_vmem [thread:$0]  (!%p5171_p7), %s5174_s25, 256, %s4472_s8, [#allocation6], %s5173_s23, %s5173_s23, %s5172_s14  }
 0x114   : > { %s4090_s13 = smov [#allocation10]   ;;  %s4091_s22 = smov [#allocation19]  }
 0x115   : > { %s653_s24 = sshll.u32 %s4090_s13, 4  ;;  %s674_s9 = sshll.u32 %s4091_s22, 4  ;;  %s654_s24 = int_to_ptr.vmem [resolvable:$true] %s653_s24  ;;  %s4521_s9 = int_to_ptr.vmem [resolvable:$true] %s674_s9 }
 0x116   : > { %s5175_s2 = sld [smem:[#allocation44_spill]] }
 0x11c   : > { %s3842_s3 = scalar_lea.hbm %s5175_s2, 16 }
 0x11d   : > { %p3843_p12 = scmp.ne.s32.totalorder %s5175_s2, %s3842_s3  ;;  %p3849_p9 = scmp.lt.u32.totalorder %s3842_s3, %s5175_s2 }
 0x11f   : > { %p3845_p0 = pnand %p3843_p12, %p5170_p5 }
 0x121   : > { %p3846_p2 = pneg %p3845_p0 }
 0x123   : > { %p3851_p10 = pnand %p3849_p9, %p3846_p2 }
 0x125   : > { %3854 = shalt.err (!%p3851_p10)
}
 0x126   : > { %s3855_s14 = scalar_lea.vmem %s654_s24, 16  ;;  %s3862_s23 = scalar_lea.vmem %s654_s24, 32 }
 0x127   : > { %p3856_p1 = scmp.ne.s32.totalorder %s654_s24, %s3855_s14  ;;  %p3863_p8 = scmp.lt.s32.totalorder %s654_s24, %s654_s24 }
 0x128   : > { %p3864_p11 = scmp.lt.s32.totalorder %s3862_s23, %s3855_s14 }
 0x129   : > { %p3858_p4 = pnand %p3856_p1, %p5170_p5 }
 0x12a   : > { %p3865_p13 = por %p3864_p11, %p3863_p8 }
 0x12b   : > { %p3859_p6 = pneg %p3858_p4 }
 0x12d   : > { %p3866_p3 = pnand %p3865_p13, %p3859_p6 }
 0x12f   : > { %3869 = shalt.err (!%p3866_p3)
}
 0x130   : > { %3372 = dma.hbm_to_vmem [thread:$0]  (!%p5171_p7), %s5175_s2, 16, %s654_s24, [#allocation9]  }
 0x131   : > { %s5176_s18 = sld [smem:[#allocation56_spill]] }
 0x137   : > { %s3870_s22 = scalar_lea.hbm %s5176_s18, 256 }
 0x138   : > { %p3871_p12 = scmp.ne.s32.totalorder %s5176_s18, %s3870_s22  ;;  %p3877_p3 = scmp.lt.u32.totalorder %s3870_s22, %s5176_s18 }
 0x13a   : > { %p3873_p0 = pnand %p3871_p12, %p5170_p5 }
 0x13c   : > { %p3874_p2 = pneg %p3873_p0 }
 0x13e   : > { %p3879_p9 = pnand %p3877_p3, %p3874_p2 }
 0x140   : > { %3882 = shalt.err (!%p3879_p9)
}
 0x141   : > { %s3883_s24 = scalar_lea.vmem %s4521_s9, 256  ;;  %p3891_p6 = scmp.lt.s32.totalorder %s4521_s9, %s4521_s9 }
 0x142   : > { %p3884_p10 = scmp.ne.s32.totalorder %s4521_s9, %s3883_s24  ;;  %p3892_p8 = scmp.lt.s32.totalorder %s3883_s24, %s3883_s24 }
 0x144   : > { %p3886_p1 = pnand %p3884_p10, %p5170_p5  ;;  %p3893_p11 = por %p3892_p8, %p3891_p6 }
 0x146   : > { %p3887_p4 = pneg %p3886_p1 }
 0x148   : > { %p3894_p13 = pnand %p3893_p11, %p3887_p4 }
 0x14a   : > { %3897 = shalt.err (!%p3894_p13)
}
 0x14b   : > { %s5177_s8 = smov 4   ;;  %s5178_s14 = smov 64  }
 0x14c   : > { %3378 = dma.hbm_to_vmem [thread:$0]  (!%p5171_p7), %s5176_s18, 256, %s4521_s9, [#allocation18], %s5178_s14, %s5178_s14, %s5177_s8  }
 0x14d   : > { %s4092_s11 = smov [#allocation22]   ;;  %s4093_s13 = smov [#allocation23]  }
 0x14e   : > { %s698_s15 = sshll.u32 %s4092_s11, 4  ;;  %s712_s22 = sshll.u32 %s4093_s13, 4  ;;  %s699_s15 = int_to_ptr.vmem [resolvable:$true] %s698_s15  ;;  %s4567_s22 = int_to_ptr.vmem [resolvable:$true] %s712_s22 }
 0x14f   : > { %s3898_s3 = scalar_lea.hbm %s5084_s20, 512 }
 0x150   : > { %p3899_p12 = scmp.ne.s32.totalorder %s5084_s20, %s3898_s3  ;;  %p3905_p3 = scmp.lt.u32.totalorder %s3898_s3, %s5084_s20 }
 0x152   : > { %p3901_p0 = pnand %p3899_p12, %p5170_p5 }
 0x154   : > { %p3902_p2 = pneg %p3901_p0 }
 0x156   : > { %p3907_p9 = pnand %p3905_p3, %p3902_p2 }
 0x158   : > { %3910 = shalt.err (!%p3907_p9)
}
 0x159   : > { %s3911_s1 = scalar_lea.vmem %s699_s15, 512  ;;  %p3919_p6 = scmp.lt.s32.totalorder %s699_s15, %s699_s15 }
 0x15a   : > { %p3912_p10 = scmp.ne.s32.totalorder %s699_s15, %s3911_s1  ;;  %p3920_p8 = scmp.lt.s32.totalorder %s3911_s1, %s3911_s1 }
 0x15c   : > { %p3914_p1 = pnand %p3912_p10, %p5170_p5  ;;  %p3921_p11 = por %p3920_p8, %p3919_p6 }
 0x15e   : > { %p3915_p4 = pneg %p3914_p1 }
 0x160   : > { %p3922_p13 = pnand %p3921_p11, %p3915_p4 }
 0x162   : > { %3925 = shalt.err (!%p3922_p13)
}
 0x163   : > { %3384 = dma.hbm_to_vmem [thread:$0]  (!%p5171_p7), %s5084_s20, 512, %s699_s15, [#allocation21], %s5178_s14, %s5178_s14, %s5177_s8  }
 0x164   : > { %s3926_s3 = scalar_lea.hbm %s5085_s21, 16 }
 0x165   : > { %p3927_p12 = scmp.ne.s32.totalorder %s5085_s21, %s3926_s3  ;;  %p3933_p3 = scmp.lt.u32.totalorder %s3926_s3, %s5085_s21 }
 0x167   : > { %p3929_p0 = pnand %p3927_p12, %p5170_p5 }
 0x169   : > { %p3930_p2 = pneg %p3929_p0 }
 0x16b   : > { %p3935_p9 = pnand %p3933_p3, %p3930_p2 }
 0x16d   : > { %3938 = shalt.err (!%p3935_p9)
}
 0x16e   : > { %s3939_s8 = scalar_lea.vmem %s4567_s22, 16  ;;  %s3946_s14 = scalar_lea.vmem %s4567_s22, 32 }
 0x16f   : > { %p3940_p10 = scmp.ne.s32.totalorder %s4567_s22, %s3939_s8  ;;  %p3947_p6 = scmp.lt.s32.totalorder %s4567_s22, %s4567_s22 }
 0x170   : > { %p3948_p8 = scmp.lt.s32.totalorder %s3946_s14, %s3939_s8 }
 0x171   : > { %p3942_p1 = pnand %p3940_p10, %p5170_p5 }
 0x172   : > { %p3949_p11 = por %p3948_p8, %p3947_p6 }
 0x173   : > { %p3943_p4 = pneg %p3942_p1 }
 0x175   : > { %p3950_p13 = pnand %p3949_p11, %p3943_p4 }
 0x177   : > { %3953 = shalt.err (!%p3950_p13)
}
 0x178   : > { %3387 = dma.hbm_to_vmem [thread:$0]  (!%p5171_p7), %s5085_s21, 16, %s4567_s22, [#allocation24]  }
 0x179   : > { %s3304_s5 = smul.u32 3, %s4389_s10  ;;  %s827_s13 = scalar_lea.vmem [#allocation16], %s4389_s10 }
 0x17a   : > { %s3305_s11 = smul.u32 48, %s4076_s30  ;;  %s834_s0 = sshll.u32 %s827_s13, 4  ;;  %s4617_s0 = int_to_ptr.vmem [resolvable:$true] %s834_s0 }
 0x17b   : > { %s5179_s29 = sld [smem:[#allocation48_spill]]  ;;  %s758_s6 = scalar_lea.vmem [#allocation13], %s3304_s5 }
 0x17c   : > { %s766_s9 = sshll.u32 %s758_s6, 4  ;;  %p5181_p7 = scmp.ne.s32.totalorder %s5164_s12, 0  ;;  %s767_s9 = int_to_ptr.vmem [resolvable:$true] %s766_s9 }
 0x181   : > { %s5180_s24 = smov %s5179_s29  ;;  %s4622_s23 = scalar_lea.hbm %s5179_s29, %s3305_s11 }
 0x182   : > { %s3954_s8 = scalar_lea.hbm %s4622_s23, 48  ;;  %s3959_s22 = scalar_lea.hbm %s5180_s24, 96 }
 0x183   : > { %p3955_p5 = scmp.ne.s32.totalorder %s4622_s23, %s3954_s8  ;;  %p3960_p2 = scmp.lt.u32.totalorder %s4622_s23, %s5180_s24 }
 0x184   : > { %p3961_p3 = scmp.lt.u32.totalorder %s3959_s22, %s3954_s8  ;;  %p3963_p10 = scmp.lt.u32.totalorder %s3954_s8, %s4622_s23 }
 0x185   : > { %p3957_p12 = pnand %p3955_p5, %p5181_p7 }
 0x186   : > { %p3962_p9 = por %p3961_p3, %p3960_p2 }
 0x187   : > { %p3958_p0 = pneg %p3957_p12 }
 0x188   : > { %p3964_p1 = por %p3963_p10, %p3962_p9 }
 0x18a   : > { %p3965_p4 = pnand %p3964_p1, %p3958_p0 }
 0x18c   : > { %3968 = shalt.err (!%p3965_p4)
}
 0x18d   : > { %s3969_s1 = scalar_lea.vmem %s767_s9, 48  ;;  %s4094_s5 = smov [#allocation13]  }
 0x18e   : > { %p3970_p6 = scmp.ne.s32.totalorder %s767_s9, %s3969_s1  ;;  %s3974_s11 = sshll.u32 %s4094_s5, 4  ;;  %s3975_s11 = int_to_ptr.vmem [resolvable:$false] %s3974_s11 }
 0x18f   : > { %s3976_s13 = scalar_lea.vmem %s3975_s11, 96  ;;  %p3977_p13 = scmp.lt.s32.totalorder %s767_s9, %s3975_s11 }
 0x190   : > { %p3972_p8 = pnand %p3970_p6, %p5181_p7  ;;  %p3978_p5 = scmp.lt.s32.totalorder %s3976_s13, %s3969_s1 }
 0x192   : > { %p3973_p11 = pneg %p3972_p8  ;;  %p3979_p12 = por %p3978_p5, %p3977_p13 }
 0x194   : > { %p3980_p2 = pnand %p3979_p12, %p3973_p11 }
 0x196   : > { %3983 = shalt.err (!%p3980_p2)
}
 0x197   : > { %p5182_p3 = scmp.ne.s32.totalorder %s5162_s27, 0  ;;  %s3984_s17 = scalar_lea.hbm %s4407_s26, 16 }
 0x198   : > { %p3985_p0 = scmp.ne.s32.totalorder %s4407_s26, %s3984_s17  ;;  %s3989_s6 = scalar_lea.hbm %s5163_s16, 32 }
 0x199   : > { %3394 = dma.hbm_to_vmem [thread:$0]  (!%p5182_p3), %s4622_s23, 48, %s767_s9, %s4412_s7  }
 0x19a   : > { %p3987_p9 = pnand %p3985_p0, %p5181_p7  ;;  %p3990_p1 = scmp.lt.u32.totalorder %s4407_s26, %s5163_s16 }
 0x19b   : > { %p3991_p4 = scmp.lt.u32.totalorder %s3989_s6, %s3984_s17  ;;  %p3993_p8 = scmp.lt.u32.totalorder %s3984_s17, %s4407_s26 }
 0x19c   : > { %p3988_p10 = pneg %p3987_p9 }
 0x19d   : > { %p3992_p6 = por %p3991_p4, %p3990_p1 }
 0x19f   : > { %p3994_p11 = por %p3993_p8, %p3992_p6 }
 0x1a1   : > { %p3995_p13 = pnand %p3994_p11, %p3988_p10 }
 0x1a3   : > { %3998 = shalt.err (!%p3995_p13)
}
 0x1a4   : > { %s3999_s7 = scalar_lea.vmem %s4617_s0, 16  ;;  %s4095_s23 = smov [#allocation16]  }
 0x1a5   : > { %p4000_p5 = scmp.ne.s32.totalorder %s4617_s0, %s3999_s7  ;;  %s4004_s9 = sshll.u32 %s4095_s23, 4  ;;  %s4005_s9 = int_to_ptr.vmem [resolvable:$false] %s4004_s9 }
 0x1a6   : > { %s4006_s10 = scalar_lea.vmem %s4005_s9, 32  ;;  %p4007_p0 = scmp.lt.s32.totalorder %s4617_s0, %s4005_s9 }
 0x1a7   : > { %p4002_p12 = pnand %p4000_p5, %p5181_p7  ;;  %p4008_p9 = scmp.lt.s32.totalorder %s4006_s10, %s3999_s7 }
 0x1a9   : > { %p4003_p2 = pneg %p4002_p12  ;;  %p4009_p1 = por %p4008_p9, %p4007_p0 }
 0x1ab   : > { %p4010_p4 = pnand %p4009_p1, %p4003_p2 }
 0x1ad   : > { %4013 = shalt.err (!%p4010_p4)
}
 0x1ae   : > { %3400 = dma.hbm_to_vmem [thread:$0]  (!%p5182_p3), %s4407_s26, 16, %s4617_s0, %s4452_s19  }
 0x1af   : > { %s5183_s22 = sld [smem:[#allocation34_spill]] }
 0x1b5   : > { %p5184_p10 = scmp.ne.s32.totalorder %s5183_s22, 0 }
 0x1b6   : > { %p5185_p7 = scmp.eq.s32.totalorder (!%p5184_p10), %s4247_s4, 0 }
 0x1b7   : > { %843 = sbr.rel (%p5184_p10) target bundleno = 4243 (0x1093), region = 108 }
 0x1be   : > { %4031 = dma.done.wait (%p5185_p7), [#allocation4], 256   ;;  %p5186_p6 = pmov %p5185_p7 }
 0x1c0   : > { %4033 = vsyncadd (%p5186_p6), [#allocation4], 4294967040  ;;  %p5187_p8 = pmov %p5186_p6 }
 0x1c1   : > { %p5188_p11 = pmov %p5186_p6 }
 0x1c2   : > { %4035 = dma.done.wait (%p5187_p8), [#allocation6], 512  }
 0x1c3   : > { %4037 = vsyncadd (%p5188_p11), [#allocation6], 4294966784  ;;  %p5189_p13 = pmov %p5186_p6 }
 0x1c4   : > { %p5190_p3 = pmov %p5186_p6 }
 0x1c5   : > { %4039 = dma.done.wait (%p5189_p13), [#allocation9], 272  }
 0x1c6   : > { %4041 = vsyncadd (%p5190_p3), [#allocation9], 4294967024  ;;  %s5191_s12 = sld [smem:[#allocation37_spill]]  ;;  %s865_s19 = sand.u32 1, %s4247_s4  }
 0x1c7   : > { %s4680_s27 = sand.u32 1, %s4068_s28   ;;  %s866_s26 = scalar_lea.sflag [#allocation12], %s865_s19 }
 0x1cc   : > { %p5192_p5 = scmp.ne.s32.totalorder %s5191_s12, 0 }
 0x1ce   : > { %4043 = dma.done.wait (%p5192_p5), %s866_s26, 64  }
 0x1cf   : > { %4045 = vsyncadd (%p5192_p5), %s866_s26, 4294967232  ;;  %s3306_s14 = smul.u32 3, %s4680_s27  ;;  %s3034_s15 = sshll.u32 %s4680_s27, 1 }
 0x1d0   : > { %s883_s5 = scalar_lea.sflag [#allocation15], %s865_s19  ;;  %s4691_s11 = scalar_lea.vmem [#allocation14], %s3034_s15 }
 0x1d1   : > { %s4689_s1 = scalar_lea.vmem [#allocation13], %s3306_s14 }
 0x1d2   : > { %4047 = dma.done.wait (%p5192_p5), %s883_s5, 48  }
 0x1d3   : > { %4049 = vsyncadd (%p5192_p5), %s883_s5, 4294967248  ;;  %p5193_p12 = pmov %p5190_p3 }
 0x1d4   : > { %p5194_p2 = pmov %p5190_p3 }
 0x1d5   : > { %4051 = dma.done.wait (%p5193_p12), [#allocation18], 272  }
 0x1d6   : > { %4053 = vsyncadd (%p5194_p2), [#allocation18], 4294967024  ;;  %p5195_p0 = pmov %p5194_p2 }
 0x1d8   : > { %4055 = dma.done.wait (%p5195_p0), [#allocation21], 528   ;;  %p5196_p9 = pmov %p5195_p0 }
 0x1d9   : > { %p5197_p1 = pmov %p5195_p0 }
 0x1da   : > { %4057 = vsyncadd (%p5196_p9), [#allocation21], 4294966768 }
 0x1db   : > { %4059 = dma.done.wait (%p5197_p1), [#allocation24], 16   ;;  %p5198_p4 = pmov %p5195_p0 }
 0x1dc   : > { %p1011_p10 = scmp.lt.s32.totalorder %s4247_s4, 1  ;;  %s5200_s22 = sld [smem:[#allocation47_spill]] }
 0x1dd   : > { %4061 = vsyncadd (%p5198_p4), [#allocation24], 4294967280  ;;  %s5201_s14 = sld [smem:[#allocation50_spill]]  ;;  %s5202_s29 = sld [smem:[#allocation49_spill]] }
 0x1de   : > { %s4712_s17 = scalar_select %p1011_p10, %s4247_s4, 1 }
 0x1df   : > { %s5203_s2 = sld [smem:[#allocation51_spill]]  ;;  %s5204_s10 = sld [smem:[#allocation53_spill]] }
 0x1e0   : > { %s3307_s30 = smul.u32 48, %s4712_s17  ;;  %s3131_s23 = sshll.u32 %s4712_s17, 5 }
 0x1e1   : > { %s3308_s7 = smul.u32 96, %s4712_s17  ;;  %s3132_s0 = sshll.u32 %s4712_s17, 6 }
 0x1e2   : > { %s4724_s12 = scalar_lea.vmem %s5200_s22, %s3307_s30  ;;  %s3133_s18 = sshll.u32 %s4712_s17, 7 }
 0x1e3   : > { %s4729_s15 = scalar_lea.vmem %s5201_s14, %s3131_s23  ;;  %s4734_s13 = scalar_lea.vmem %s5202_s29, %s3308_s7 }
 0x1e4   : > { %p5205_p7 = scmp.ne.s32.totalorder %s4247_s4, 0 }
 0x1e5   : > { %s4740_s16 = scalar_lea.vmem %s5203_s2, %s3132_s0  ;;  %s4746_s22 = scalar_lea.vmem %s5204_s10, %s3133_s18  ;;  %v3483_v0 = vld [vmem:[#allocation8] sm:$0xff] (!%p5205_p7)   ;;  %v4096_v1 = vmov (!%p5205_p7), 0.0   ;;  %v3484_v2 = vld [vmem:[#allocation8 + $0x8] sm:$0xff] (!%p5205_p7)   ;;  %vm4097_vm0 = vmmov (!%p5205_p7), 0   ;;  %vm1070_vm1 = vcmask (!%p5205_p7), 261120   ;;  %vm1115_vm2 = vcmask (!%p5205_p7), 523264  }
 0x1e6   : > { %1043 = sbr.rel (%p5205_p7) target bundleno = 712 (0x2c8), region = 168  ;;  %3196 = vmatprep.subr.bf16.mxu0 (!%p5205_p7), %v4096_v1  ;;  %3200 = vmatprep.mubr.msk.bf16.mxu0 (!%p5205_p7), %vm4097_vm0, %v4096_v1  ;;  %s5206_s2 = sld [smem:[#allocation38_spill]] (!%p5205_p7)  ;;  %v3049_v6 = vld [vmem:[#allocation10] ss:$0 sm:$0xff] (!%p5205_p7) }
 0x1e7   : > { %3197 = vmatpush3.bf16.msra.mxu0 (!%p5205_p7), %v3483_v0 }
 0x1e8   : > { %3198 = vmatprep.subr.bf16.mxu0 (!%p5205_p7), %v4096_v1 }
 0x1eb   : > { %3199 = vmatpush3.bf16.msra.mxu0 (!%p5205_p7), %v3484_v2 }
 0x1ec   : > { %v1044_v3 = vld [vmem:[%s5206_s2] sm:$0xff] (!%p5205_p7)  ;;  %v1045_v4 = vld [vmem:[%s5206_s2 + $0x8] sm:$0xff] (!%p5205_p7) }
 0x1ed   : > { %v1046_v5 = vpack.c.bf16 %v1045_v4, %v1044_v3 }
 0x1ef   : > { %3201 = vmatmul.mubr.msk.bf16.vlgmr.msra.gmra.mrb[0].mxu0 %vm1070_vm1, %v1046_v5 }
 0x2c2   : > { %v1108_v7 = vpop.f32.mrb[0].mxu0 }
 0x2c3   : > { %v1109_v8 = vadd.f32 %v3049_v6, %v1108_v7  ;;  %v3202_v9 = vpop.f32.mrb[1].mxu0 }
 0x2c4   : > { %v1111_v10 = vpop.f32.mrb[2].mxu0 }
 0x2c5   : > { %1116 = vst.msk [vmem:[#allocation2] sm:$0xff] %vm1115_vm2, %v1109_v8  ;;  %v1112_v11 = vadd.f32 %v3049_v6, %v1111_v10  ;;  %v3203_v12 = vpop.f32.mrb[3].mxu0 }
 0x2c7   : > { %1117 = vst.msk [vmem:[#allocation2 + $0x8] sm:$0xff] %vm1115_vm2, %v1112_v11 }
 0x2c8 PF: > { %vm1269_vm3 = vcmask 523264   ;;  %v3500_v15 = vld [vmem:[%s4724_s12 + $0x4] ss:$12 sps:$4 sm:$0xff]   ;;  %v3502_v16 = vld [vmem:[%s4724_s12] ss:$12 sps:$4 sm:$0xff]   ;;  %v4098_v18 = vmov 0   ;;  %v1133_v44 = vlaneseq }
 0x2c9   : > { %1216 = vmatprep.mubr.bf16.mxu0 %v4098_v18  ;;  %v3503_v19 = vld [vmem:[%s4724_s12 + $0x1c] ss:$12 sps:$4 sm:$0xff]   ;;  %1184 = vmatprep.subr.bf16.mxu0 %v3500_v15  ;;  %v3505_v21 = vld [vmem:[%s4724_s12 + $0x18] ss:$12 sps:$4 sm:$0xff]   ;;  %s5207_s26 = sld [smem:[#allocation39_spill]]  ;;  %vm1180_vm4 = vcmask 261120  }
 0x2ca   : > { %1185 = vmatpush1.bf16.msra.mxu0 %v3502_v16  ;;  %v3506_v35 = vld [vmem:[%s4724_s12 + $0x8] ss:$12 sps:$4 sm:$0xff]   ;;  %v4099_v36 = vmov 0.0   ;;  %vm4100_vm5 = vmmov 0   ;;  %v3507_v37 = vld [vmem:[%s4724_s12 + $0x20] ss:$12 sps:$4 sm:$0xff]  }
 0x2cb   : > { %1186 = vmatprep.subr.bf16.mxu0 %v3503_v19  ;;  %3204 = vmatprep.subr.bf16.mxu1 %v4099_v36  ;;  %v3510_v38 = vld [vmem:[%s4734_s13 + $0x4] ss:$12 sps:$4 sm:$0xff]   ;;  %v3508_v39 = vld [vmem:[%s4734_s13] ss:$12 sps:$4 sm:$0xff]   ;;  %v3513_v40 = vld [vmem:[%s4734_s13 + $0x1c] ss:$12 sps:$4 sm:$0xff]  }
 0x2cc   : > { %v4756_v13 = vld [vmem:[#allocation2] sm:$0xff]  ;;  %3208 = vmatprep.mubr.msk.bf16.mxu1 %vm4100_vm5, %v4099_v36  ;;  %3205 = vmatpush3.bf16.msra.mxu1 %v3506_v35  ;;  %v3514_v43 = vld [vmem:[%s4734_s13 + $0x30] ss:$12 sps:$4 sm:$0xff]   ;;  %v4809_v45 = vshrl.u32 %v1133_v44, 7  ;;  %v3519_v47 = vld [vmem:[%s4734_s13 + $0x4c] ss:$12 sps:$4 sm:$0xff]  }
 0x2cd   : > { %v1270_v14 = vsel %vm1269_vm3, %v4756_v13, 0.0  ;;  %3206 = vmatprep.subr.bf16.mxu1 %v4099_v36  ;;  %v3511_v41 = vld [vmem:[%s4734_s13 + $0x18] ss:$12 sps:$4 sm:$0xff]   ;;  %v3516_v42 = vld [vmem:[%s4734_s13 + $0x34] ss:$12 sps:$4 sm:$0xff]   ;;  %v1490_v61 = vld [vmem:[#allocation5 + $0x8] sm:$0xff] }
 0x2ce   : > { %v4762_v17 = vld [vmem:[#allocation2 + $0x8] sm:$0xff]  ;;  %1271 = vadd.xlane.f32.xlu0 %v1270_v14  ;;  %1187 = vmatpush1.bf16.msra.mxu0 %v3505_v21  ;;  %v1135_v46 = vsub.s32 0, %v4809_v45  ;;  %v4814_v48 = vld [vmem:[%s4689_s1] sm:$0x7]  ;;  %s4101_s1 = smov 64   ;;  %v1489_v59 = vld [vmem:[#allocation5] sm:$0xff] }
 0x2cf   : > { %v1273_v20 = vsel %vm1269_vm3, %v4762_v17, 0.0  ;;  %v1120_v22 = vld [vmem:[%s5207_s26] sm:$0xff]  ;;  %v1121_v23 = vld [vmem:[%s5207_s26 + $0x8] sm:$0xff]  ;;  %3224 = vmatprep.subr.bf16.mxu0 %v4099_v36  ;;  %v4827_v60 = vld [vmem:[#allocation3] sm:$0xff]  ;;  %s5208_s29 = sld [smem:[#allocation45_spill]]  ;;  %s4104_s9 = smov 112  }
 0x2d0   : > { %v4775_v24 = vpack.c.bf16 %v1121_v23, %v1120_v22  ;;  %3207 = vmatpush3.bf16.msra.mxu1 %v3507_v37  ;;  %v3517_v49 = vld [vmem:[%s4734_s13 + $0x48] ss:$12 sps:$4 sm:$0xff]   ;;  %v1136_v50 = vrot.slane %v4814_v48, %v1135_v46  ;;  %v4833_v62 = vld [vmem:[#allocation3 + $0x8] sm:$0xff]  ;;  %v3521_v23 = vld [vmem:[%s4734_s13 + $0x20] ss:$12 sps:$4 sm:$0xff]   ;;  %s4105_s30 = smov 16  }
 0x2d1   : > { %1403 = vmatprep.subr.bf16.mxu1 %v3510_v38  ;;  %v3520_v21 = vld [vmem:[%s4734_s13 + $0x8] ss:$12 sps:$4 sm:$0xff]   ;;  %s4106_s10 = smov 96   ;;  %s4107_s7 = smov 80   ;;  %vm1543_vm6 = vcmask 130048   ;;  %vm2067_vm7 = vcmask 392192  }
 0x2d2   : > { %1274 = vadd.xlane.f32.xlu0 %v1273_v20  ;;  %3059 = vmatmul.mubr.msk.bf16.vlgmr.msra.gmra.mrb[0].mxu0 %vm1180_vm4, %v4775_v24  ;;  %p3116_p6 = scmp.ne.s32.totalorder %s4247_s4, 1 }
 0x2d3   : > { %3226 = vmatprep.mubr.msk.bf16.mxu0 %vm4100_vm5, %v4099_v36  ;;  %3209 = vmatmul.mubr.msk.bf16.vlgmr.msra.gmra.mrb[0].mxu1 %vm1180_vm4, %v4775_v24  ;;  %vm4109_vm8 = vmmov (!%p3116_p6), 0   ;;  %s4110_s4 = smov (!%p3116_p6), 64  }
 0x2d4   : > { %1404 = vmatpush1.bf16.msra.mxu1 %v3508_v39  ;;  %1435 = vmatprep.mubr.bf16.mxu1 %v4098_v18 }
 0x2d5   : > { %1405 = vmatprep.subr.bf16.mxu1 %v3513_v40  ;;  %s5209_s6 = scalar_lea.vmem %s5208_s29, %s4712_s17  ;;  %s4103_s17 = smov 32  }
 0x2d6   : > { %v3061_v8 = vld [vmem:[%s5209_s6] ss:$0 sm:$0xff] }
 0x2d8   : > { %1406 = vmatpush1.bf16.msra.mxu1 %v3511_v41 }
 0x2d9   : > { %1407 = vmatprep.subr.bf16.mxu1 %v3516_v42 }
 0x2dc   : > { %1408 = vmatpush1.bf16.msra.mxu1 %v3514_v43 }
 0x2dd   : > { %1409 = vmatprep.subr.bf16.mxu1 %v3519_v47 }
 0x2e0   : > { %1410 = vmatpush1.bf16.msra.mxu1 %v3517_v49 }
 0x2e1   : > { %3212 = vmatprep.subr.bf16.mxu1 %v4099_v36 }
 0x35b   : > { %v1272_v25 = vpop.xlane.xlu0 %1271 }
 0x35c   : > { %v1277_v26 = vmul.f32 0.015625, %v1272_v25  ;;  %v3522_v25 = vld [vmem:[%s4734_s13 + $0x38] ss:$12 sps:$4 sm:$0xff]  }
 0x35e   : > { %v4780_v27 = vsub.f32 %v4756_v13, %v1277_v26  ;;  %v3523_v26 = vld [vmem:[%s4734_s13 + $0x50] ss:$12 sps:$4 sm:$0xff]   ;;  %s4102_s13 = smov 48  }
 0x35f   : > { %v1275_v28 = vpop.xlane.xlu0 %1274 }
 0x360   : > { %v1278_v29 = vmul.f32 0.015625, %v1275_v28  ;;  %v1281_v30 = vmul.f32 %v4780_v27, %v4780_v27 }
 0x362   : > { %v4785_v31 = vsub.f32 %v4762_v17, %v1278_v29  ;;  %v1283_v32 = vsel %vm1269_vm3, %v1281_v30, 0.0 }
 0x363   : > { %1284 = vadd.xlane.f32.xlu1 %v1283_v32 }
 0x364   : > { %v1282_v33 = vmul.f32 %v4785_v31, %v4785_v31 }
 0x366   : > { %v1286_v34 = vsel %vm1269_vm3, %v1282_v33, 0.0 }
 0x367   : > { %1287 = vadd.xlane.f32.xlu1 %v1286_v34 }
 0x3a5   : > { %v1218_v51 = vpop.f32.mrb[0].mxu0 }
 0x3a6   : > { %v1219_v52 = vadd.f32 %v1218_v51, %v1136_v50  ;;  %v4821_v53 = vpop.f32.mrb[1].mxu0 }
 0x3a7   : > { %v1222_v54 = vpop.f32.mrb[2].mxu0 }
 0x3a8   : > { %v1305_v55 = vadd.f32 1.0, %v1219_v52  ;;  %v1223_v56 = vadd.f32 %v1222_v54, %v1136_v50  ;;  %v4823_v57 = vpop.f32.mrb[3].mxu0 }
 0x3aa   : > { %v1306_v58 = vadd.f32 1.0, %v1223_v56  ;;  %1309 = vrot.lane.b32.xlu0 %v1305_v55, %s4101_s1 }
 0x3ac   : > { %1311 = vrot.lane.b32.xlu1 %v1306_v58, %s4101_s1 }
 0x3ae   : > { %1516 = vrot.lane.b32.xlu0 %v4827_v60, %s4101_s1 }
 0x3b0   : > { %1495 = vrot.lane.b32.xlu1 %v1489_v59, %s4101_s1 }
 0x3b4   : > { %1497 = vrot.lane.b32.xlu1 %v1490_v61, %s4101_s1 }
 0x3b8   : > { %1518 = vrot.lane.b32.xlu1 %v4833_v62, %s4101_s1 }
 0x3f0   : > { %v1285_v63 = vpop.xlane.xlu1 %1284 }
 0x3f1   : > { %v1289_v1 = vmul.f32 0.015625, %v1285_v63 }
 0x3f3   : > { %v1291_v3 = vadd.f32 1e-05, %v1289_v1 }
 0x3f4   : > { %v1288_v0 = vpop.xlane.xlu1 %1287 }
 0x3f5   : > { %v1290_v2 = vmul.f32 0.015625, %v1288_v0  ;;  %3556 = vrsqrt.f32 %v1291_v3 }
 0x3f7   : > { %v1292_v4 = vadd.f32 1e-05, %v1290_v2 }
 0x3f9   : > { %3558 = vrsqrt.f32 %v1292_v4 }
 0x3ff   : > { %v3557_v5 = vpop.eup %3556 }
 0x400   : > { %v1295_v7 = vmul.f32 %v3557_v5, %v4780_v27  ;;  %v4858_v27 = vpop.f32.mrb[0].mxu1 }
 0x401   : > { %v3210_v28 = vpop.f32.mrb[1].mxu1 }
 0x402   : > { %v1303_v10 = vmul.f32 %v3061_v8, %v1295_v7  ;;  %v4860_v29 = vpop.f32.mrb[2].mxu1 }
 0x403   : > { %v3559_v6 = vpop.eup %3558  ;;  %v3211_v30 = vpop.f32.mrb[3].mxu1 }
 0x404   : > { %v1296_v9 = vmul.f32 %v3559_v6, %v4785_v31 }
 0x406   : > { %v1304_v14 = vmul.f32 %v3061_v8, %v1296_v9 }
 0x41c   : > { %v1310_v11 = vpop.permute.xlu0 %1309 }
 0x41d   : > { %v1315_v12 = vmul.f32 %v1310_v11, %v1303_v10 }
 0x41e   : > { %v1312_v15 = vpop.permute.xlu1 %1311 }
 0x41f   : > { %v1316_v16 = vmul.f32 %v1312_v15, %v1304_v14  ;;  %v1317_v19 = vadd.f32 %v1315_v12, %v1219_v52 }
 0x420   : > { %v1517_v50 = vpop.permute.xlu0 %1516 }
 0x421   : > { %v1318_v20 = vadd.f32 %v1316_v16, %v1223_v56 }
 0x422   : > { %v1496_v37 = vpop.permute.xlu1 %1495 }
 0x423   : > { %v1319_v22 = vpack.c.bf16 %v1318_v20, %v1317_v19  ;;  %v1538_v19 = vld [vmem:[#allocation7] sm:$0xff] }
 0x425   : > { %3074 = vmatmul.mubr.msk.bf16.vlgmr.msra.gmra.mrb[4].mxu1 %vm1269_vm3, %v1319_v22 }
 0x426   : > { %3213 = vmatpush3.bf16.msra.mxu1 %v3520_v21  ;;  %3220 = vmatprep.mubr.msk.bf16.mxu1 %vm4100_vm5, %v4099_v36  ;;  %v1498_v47 = vpop.permute.xlu1 %1497 }
 0x427   : > { %3214 = vmatprep.subr.bf16.mxu1 %v4099_v36 }
 0x42a   : > { %3215 = vmatpush3.bf16.msra.mxu1 %v3521_v23  ;;  %v1519_v51 = vpop.permute.xlu1 %1518  ;;  %v1539_v23 = vld [vmem:[#allocation7 + $0x8] sm:$0xff] }
 0x42b   : > { %3216 = vmatprep.subr.bf16.mxu1 %v4099_v36 }
 0x42e   : > { %3217 = vmatpush3.bf16.msra.mxu1 %v3522_v25 }
 0x42f   : > { %3218 = vmatprep.subr.bf16.mxu1 %v4099_v36 }
 0x432   : > { %3219 = vmatpush3.bf16.msra.mxu1 %v3523_v26 }
 0x433   : > { %3230 = vmatprep.subr.bf16.mxu1 %v4099_v36 }
 0x435   : > { %3221 = vmatmul.mubr.msk.bf16.vlgmr.msra.gmra.mrb[8].mxu1 %vm1269_vm3, %v1319_v22 }
 0x436   : > { %3232 = vmatprep.mubr.msk.bf16.mxu1 %vm4100_vm5, %v4099_v36 }
 0x4f8   : > { %v1437_v31 = vpop.f32.mrb[4].mxu1 }
 0x4f9   : > { %v1439_v32 = vpop.f32.mrb[5].mxu1  ;;  %v1522_v54 = vmul.f32 %v1517_v50, %v1437_v31  ;;  %v1491_v63 = vmul.f32 %v4827_v60, %v1437_v31 }
 0x4fa   : > { %v1441_v33 = vpop.f32.mrb[6].mxu1  ;;  %v1501_v44 = vmul.f32 %v1496_v37, %v1439_v32 }
 0x4fb   : > { %v1443_v34 = vpop.f32.mrb[7].mxu1  ;;  %v1523_v55 = vmul.f32 %v1519_v51, %v1441_v33  ;;  %v1492_v0 = vmul.f32 %v4833_v62, %v1441_v33 }
 0x4fc   : > { %v4862_v35 = vpack.c.bf16 %v1443_v34, %v1439_v32  ;;  %v1502_v49 = vmul.f32 %v1498_v47, %v1443_v34 }
 0x4fe   : > { %3231 = vmatpush3.bf16.msra.mxu1 %v4862_v35 }
 0x4ff   : > { %3242 = vmatprep.subr.bf16.mxu1 %v4099_v36 }
 0x508   : > { %v1480_v38 = vpop.f32.mrb[8].mxu1 }
 0x509   : > { %v1524_v39 = vmul.f32 %v1489_v59, %v1480_v38  ;;  %v3222_v40 = vpop.f32.mrb[9].mxu1 }
 0x50a   : > { %v1483_v41 = vpop.f32.mrb[10].mxu1 }
 0x50b   : > { %v1525_v42 = vmul.f32 %v1490_v61, %v1483_v41  ;;  %1528 = vrot.lane.b32.xlu0 %v1524_v39, %s4101_s1  ;;  %v3223_v43 = vpop.f32.mrb[11].mxu1 }
 0x50d   : > { %1530 = vrot.lane.b32.xlu1 %v1525_v42, %s4101_s1 }
 0x50f   : > { %1505 = vrot.lane.b32.xlu0 %v1501_v44, %s4101_s1 }
 0x511   : > { %1507 = vrot.lane.b32.xlu1 %v1502_v49, %s4101_s1 }
 0x57d   : > { %v1529_v52 = vpop.permute.xlu0 %1528 }
 0x57e   : > { %v1534_v58 = vadd.f32 %v1529_v52, %v1522_v54 }
 0x57f   : > { %v1531_v56 = vpop.permute.xlu1 %1530 }
 0x580   : > { %v1535_v59 = vadd.f32 %v1531_v56, %v1523_v55 }
 0x581   : > { %v1506_v61 = vpop.permute.xlu0 %1505 }
 0x582   : > { %v1536_v1 = vpack.c.bf16 %v1535_v59, %v1534_v58  ;;  %v1511_v3 = vadd.f32 %v1506_v61, %v1491_v63 }
 0x583   : > { %v1508_v2 = vpop.permute.xlu1 %1507 }
 0x584   : > { %v1512_v4 = vadd.f32 %v1508_v2, %v1492_v0  ;;  %1665 = vrot.lane.b32.xlu1 %v1536_v1, %s4102_s13  ;;  %1541 = vrot.lane.b32.xlu0 %v1536_v1, %s4101_s1 }
 0x586   : > { %v1513_v5 = vpack.c.bf16 %v1512_v4, %v1511_v3 }
 0x588   : > { %1791 = vrot.lane.b32.xlu1 %v1536_v1, %s4103_s17  ;;  %1663 = vrot.lane.b32.xlu0 %v1513_v5, %s4104_s9 }
 0x58c   : > { %1916 = vrot.lane.b32.xlu1 %v1536_v1, %s4105_s30  ;;  %1789 = vrot.lane.b32.xlu0 %v1513_v5, %s4106_s10 }
 0x590   : > { %1914 = vrot.lane.b32.xlu0 %v1513_v5, %s4107_s7 }
 0x5f6   : > { %v1542_v60 = vpop.permute.xlu0 %1541  ;;  %v1666_v6 = vpop.permute.xlu1 %1665 }
 0x5f7   : > { %v1548_v62 = vsel %vm1543_vm6, %v1542_v60, 0  ;;  %v1671_v7 = vsel %vm1543_vm6, %v1666_v6, 0 }
 0x5f8   : > { %3225 = vmatpush3.bf16.xpose.msra.mxu0 %v1548_v62 }
 0x5f9   : > { %3236 = vmatprep.subr.bf16.mxu0 %v4099_v36 }
 0x5fa   : > { %v1792_v8 = vpop.permute.xlu1 %1791  ;;  %v1664_v9 = vpop.permute.xlu0 %1663 }
 0x5fb   : > { %v1797_v10 = vsel %vm1543_vm6, %v1792_v8, 0 }
 0x5fe   : > { %v1917_v11 = vpop.permute.xlu1 %1916  ;;  %v1790_v12 = vpop.permute.xlu0 %1789 }
 0x5ff   : > { %3227 = vmatmul.mubr.msk.bf16.vlgmr.msra.gmra.mrb[4].mxu0 %vm1543_vm6, %v1513_v5  ;;  %v1922_v14 = vsel %vm1543_vm6, %v1917_v11, 0 }
 0x600   : > { %3237 = vmatpush3.bf16.xpose.msra.mxu0 %v1671_v7  ;;  %3238 = vmatprep.mubr.msk.bf16.mxu0 %vm4100_vm5, %v4099_v36 }
 0x601   : > { %3248 = vmatprep.subr.bf16.mxu0 %v4099_v36 }
 0x602   : > { %v1915_v15 = vpop.permute.xlu0 %1914 }
 0x607   : > { %3239 = vmatmul.mubr.msk.bf16.vlgmr.msra.gmra.mrb[8].mxu0 %vm1543_vm6, %v1664_v9 }
 0x608   : > { %3249 = vmatpush3.bf16.xpose.msra.mxu0 %v1797_v10  ;;  %3250 = vmatprep.mubr.msk.bf16.mxu0 %vm4100_vm5, %v4099_v36 }
 0x609   : > { %3260 = vmatprep.subr.bf16.mxu0 %v4099_v36 }
 0x60f   : > { %3251 = vmatmul.mubr.msk.bf16.vlgmr.msra.gmra.mrb[12].mxu0 %vm1543_vm6, %v1790_v12 }
 0x610   : > { %3261 = vmatpush3.bf16.xpose.msra.mxu0 %v1922_v14  ;;  %3262 = vmatprep.mubr.msk.bf16.mxu0 %vm4100_vm5, %v4099_v36 }
 0x611   : > { %3272 = vmatprep.subr.bf16.mxu0 %v4099_v36 }
 0x617   : > { %3263 = vmatmul.mubr.msk.bf16.vlgmr.msra.gmra.mrb[16].mxu0 %vm1543_vm6, %v1915_v15 }
 0x618   : > { %3280 = vmatprep.mubr.msk.bf16.mxu0 %vm4100_vm5, %v4099_v36 }
 0x6d2   : > { %v1584_v16 = vpop.f32.mrb[4].mxu0 }
 0x6d3   : > { %v1591_v20 = vmul.f32 0.25, %v1584_v16  ;;  %v3228_v21 = vpop.f32.mrb[5].mxu0 }
 0x6d4   : > { %v1587_v22 = vpop.f32.mrb[6].mxu0 }
 0x6d5   : > { %v1592_v25 = vmul.f32 0.25, %v1587_v22  ;;  %v3229_v26 = vpop.f32.mrb[7].mxu0  ;;  %v1593_v28 = vadd.f32 %v1591_v20, %v1538_v19 }
 0x6d7   : > { %v1595_v30 = vsel %vm1543_vm6, %v1593_v28, -inf  ;;  %v1594_v31 = vadd.f32 %v1592_v25, %v1539_v23 }
 0x6d8   : > { %1596 = vmax.xlane.f32.xlu1 %v1595_v30 }
 0x6d9   : > { %v1598_v32 = vsel %vm1543_vm6, %v1594_v31, -inf }
 0x6da   : > { %1599 = vmax.xlane.f32.xlu0 %v1598_v32  ;;  %v1707_v33 = vpop.f32.mrb[8].mxu0 }
 0x6db   : > { %v1714_v34 = vmul.f32 0.25, %v1707_v33  ;;  %v3240_v37 = vpop.f32.mrb[9].mxu0 }
 0x6dc   : > { %v1710_v38 = vpop.f32.mrb[10].mxu0 }
 0x6dd   : > { %v1715_v39 = vmul.f32 0.25, %v1710_v38  ;;  %v3241_v40 = vpop.f32.mrb[11].mxu0  ;;  %v4901_v41 = vadd.f32 %v1714_v34, %v1538_v19 }
 0x6df   : > { %v1718_v42 = vsel %vm1543_vm6, %v4901_v41, -inf  ;;  %v1717_v43 = vadd.f32 %v1715_v39, %v1539_v23 }
 0x6e0   : > { %1719 = vmax.xlane.f32.xlu0 %v1718_v42 }
 0x6e1   : > { %v1721_v50 = vsel %vm1543_vm6, %v1717_v43, -inf }
 0x6e2   : > { %v1833_v44 = vpop.f32.mrb[12].mxu0 }
 0x6e3   : > { %v1840_v47 = vmul.f32 0.25, %v1833_v44  ;;  %v3252_v49 = vpop.f32.mrb[13].mxu0 }
 0x6e4   : > { %1722 = vmax.xlane.f32.xlu0 %v1721_v50  ;;  %v1836_v51 = vpop.f32.mrb[14].mxu0 }
 0x6e5   : > { %v1841_v52 = vmul.f32 0.25, %v1836_v51  ;;  %v3253_v54 = vpop.f32.mrb[15].mxu0  ;;  %v1842_v55 = vadd.f32 %v1840_v47, %v1538_v19 }
 0x6e7   : > { %v1844_v56 = vsel %vm1543_vm6, %v1842_v55, -inf  ;;  %v1843_v58 = vadd.f32 %v1841_v52, %v1539_v23 }
 0x6e8   : > { %1845 = vmax.xlane.f32.xlu1 %v1844_v56 }
 0x6e9   : > { %v1847_v59 = vsel %vm1543_vm6, %v1843_v58, -inf }
 0x6ea   : > { %1848 = vmax.xlane.f32.xlu0 %v1847_v59  ;;  %v1958_v61 = vpop.f32.mrb[16].mxu0 }
 0x6eb   : > { %v1965_v63 = vmul.f32 0.25, %v1958_v61  ;;  %v3264_v0 = vpop.f32.mrb[17].mxu0 }
 0x6ec   : > { %v1961_v1 = vpop.f32.mrb[18].mxu0 }
 0x6ed   : > { %v1966_v2 = vmul.f32 0.25, %v1961_v1  ;;  %v3265_v3 = vpop.f32.mrb[19].mxu0  ;;  %v1967_v4 = vadd.f32 %v1965_v63, %v1538_v19 }
 0x6ef   : > { %v1969_v5 = vsel %vm1543_vm6, %v1967_v4, -inf  ;;  %v1968_v60 = vadd.f32 %v1966_v2, %v1539_v23 }
 0x6f0   : > { %1970 = vmax.xlane.f32.xlu1 %v1969_v5 }
 0x6f1   : > { %v1972_v62 = vsel %vm1543_vm6, %v1968_v60, -inf }
 0x6f2   : > { %1973 = vmax.xlane.f32.xlu0 %v1972_v62 }
 0x765   : > { %v1597_v6 = vpop.xlane.xlu1 %1596 }
 0x766   : > { %v1601_v7 = vsub.f32 %v1593_v28, %v1597_v6 }
 0x767   : > { %v1600_v8 = vpop.xlane.xlu0 %1599 }
 0x768   : > { %v1603_v9 = vmul.f32 1.442695, %v1601_v7  ;;  %v1602_v10 = vsub.f32 %v1594_v31, %v1600_v8 }
 0x76a   : > { %3560 = vpow2.f32 %v1603_v9  ;;  %v1605_v11 = vmul.f32 1.442695, %v1602_v10 }
 0x76c   : > { %3562 = vpow2.f32 %v1605_v11 }
 0x76d   : > { %v1720_v12 = vpop.xlane.xlu0 %1719 }
 0x76e   : > { %v1724_v40 = vsub.f32 %v4901_v41, %v1720_v12 }
 0x771   : > { %v1723_v14 = vpop.xlane.xlu0 %1722 }
 0x772   : > { %v1725_v15 = vsub.f32 %v1717_v43, %v1723_v14  ;;  %v1726_v43 = vmul.f32 1.442695, %v1724_v40 }
 0x774   : > { %v3561_v16 = vpop.eup %3560  ;;  %v1728_v19 = vmul.f32 1.442695, %v1725_v15 }
 0x775   : > { %v1607_v20 = vsel %vm1543_vm6, %v3561_v16, 0.0  ;;  %v1846_v42 = vpop.xlane.xlu1 %1845 }
 0x776   : > { %v3563_v21 = vpop.eup %3562  ;;  %3564 = vpow2.f32 %v1728_v19  ;;  %1608 = vadd.xlane.f32.xlu1 %v1607_v20  ;;  %v1850_v44 = vsub.f32 %v1842_v55, %v1846_v42  ;;  %v3525_v42 = vld [vmem:[%s4729_s15 + $0x8] sm:$0xff]  }
 0x777   : > { %v1849_v22 = vpop.xlane.xlu0 %1848  ;;  %v1610_v23 = vsel %vm1543_vm6, %v3563_v21, 0.0 }
 0x778   : > { %v1851_v25 = vsub.f32 %v1843_v58, %v1849_v22  ;;  %1611 = vadd.xlane.f32.xlu0 %v1610_v23  ;;  %v1852_v49 = vmul.f32 1.442695, %v1850_v44 }
 0x77a   : > { %v1854_v26 = vmul.f32 1.442695, %v1851_v25 }
 0x77c   : > { %3566 = vpow2.f32 %v1854_v26 }
 0x77d   : > { %v1971_v47 = vpop.xlane.xlu1 %1970 }
 0x77e   : > { %v1975_v50 = vsub.f32 %v1967_v4, %v1971_v47  ;;  %v3526_v47 = vld [vmem:[%s4729_s15 + $0x10] sm:$0xff]  }
 0x77f   : > { %v1974_v28 = vpop.xlane.xlu0 %1973 }
 0x780   : > { %v3565_v30 = vpop.eup %3564  ;;  %v1976_v31 = vsub.f32 %v1968_v60, %v1974_v28  ;;  %v1977_v51 = vmul.f32 1.442695, %v1975_v50  ;;  %v3527_v50 = vld [vmem:[%s4729_s15 + $0x18] sm:$0xff]  }
 0x781   : > { %v1733_v32 = vsel %vm1543_vm6, %v3565_v30, 0.0 }
 0x782   : > { %v1979_v33 = vmul.f32 1.442695, %v1976_v31  ;;  %1734 = vadd.xlane.f32.xlu0 %v1733_v32 }
 0x784   : > { %3568 = vpow2.f32 %v1979_v33 }
 0x785   : > { %3570 = vpow2.f32 %v1726_v43 }
 0x786   : > { %v4913_v34 = vpop.eup %3566  ;;  %3572 = vpow2.f32 %v1852_v49 }
 0x787   : > { %1742 = vrot.lane.b32.xlu1 %v4862_v35, %s4104_s9  ;;  %v1859_v37 = vsel %vm1543_vm6, %v4913_v34, 0.0  ;;  %3574 = vpow2.f32 %v1977_v51 }
 0x788   : > { %1860 = vadd.xlane.f32.xlu0 %v1859_v37  ;;  %v3524_v37 = vld [vmem:[%s4729_s15] sm:$0xff]   ;;  %s5210_s15 = scalar_lea.vmem [#allocation11], %s4680_s27 }
 0x789   : > { %3273 = vmatpush3.bf16.msra.mxu0 %v3524_v37 }
 0x78a   : > { %3274 = vmatprep.subr.bf16.mxu0 %v4099_v36 }
 0x78d   : > { %3275 = vmatpush3.bf16.msra.mxu0 %v3525_v42  ;;  %v3533_v42 = vld [vmem:[%s4740_s16 + $0x14] ss:$8 sps:$4 sm:$0xff]  }
 0x78e   : > { %v4919_v38 = vpop.eup %3568  ;;  %3276 = vmatprep.subr.bf16.mxu0 %v4099_v36 }
 0x78f   : > { %v1984_v39 = vsel %vm1543_vm6, %v4919_v38, 0.0  ;;  %v3571_v52 = vpop.eup %3570 }
 0x790   : > { %1985 = vadd.xlane.f32.xlu0 %v1984_v39  ;;  %v1730_v54 = vsel %vm1543_vm6, %v3571_v52, 0.0  ;;  %v3573_v56 = vpop.eup %3572 }
 0x791   : > { %v1856_v41 = vsel %vm1543_vm6, %v3573_v56, 0.0  ;;  %v3575_v58 = vpop.eup %3574  ;;  %3277 = vmatpush3.bf16.msra.mxu0 %v3526_v47  ;;  %v3539_v47 = vld [vmem:[%s4740_s16 + $0x34] ss:$8 sps:$4 sm:$0xff]  }
 0x792   : > { %v1981_v55 = vsel %vm1543_vm6, %v3575_v58, 0.0  ;;  %3278 = vmatprep.subr.bf16.mxu0 %v4099_v36 }
 0x795   : > { %3279 = vmatpush3.bf16.msra.mxu0 %v3527_v50 }
 0x7a6   : > { %1867 = vrot.lane.b32.xlu0 %v4862_v35, %s4106_s10 }
 0x7ab   : > { %1731 = vadd.xlane.f32.xlu1 %v1730_v54 }
 0x7af   : > { %1857 = vadd.xlane.f32.xlu1 %v1856_v41 }
 0x7b3   : > { %1982 = vadd.xlane.f32.xlu1 %v1981_v55 }
 0x7c4   : > { %1992 = vrot.lane.b32.xlu1 %v4862_v35, %s4107_s7 }
 0x803   : > { %v1609_v59 = vpop.xlane.xlu1 %1608 }
 0x804   : > { %3576 = vrcp.f32 %v1609_v59 }
 0x805   : > { %v1612_v61 = vpop.xlane.xlu0 %1611 }
 0x806   : > { %3578 = vrcp.f32 %v1612_v61 }
 0x807   : > { %v1743_v4 = vpop.permute.xlu1 %1742 }
 0x80e   : > { %v3577_v63 = vpop.eup %3576 }
 0x80f   : > { %v1615_v1 = vmul.f32 %v3577_v63, %v3561_v16  ;;  %v1735_v5 = vpop.xlane.xlu0 %1734 }
 0x810   : > { %v3579_v0 = vpop.eup %3578  ;;  %3580 = vrcp.f32 %v1735_v5 }
 0x811   : > { %v1616_v2 = vmul.f32 %v3579_v0, %v3563_v21 }
 0x813   : > { %v1617_v3 = vpack.c.bf16 %v1616_v2, %v1615_v1 }
 0x815   : > { %3233 = vmatmul.mubr.msk.bf16.vlgmr.msra.gmra.mrb[12].mxu1 %vm1543_vm6, %v1617_v3  ;;  %v1861_v60 = vpop.xlane.xlu0 %1860 }
 0x816   : > { %3243 = vmatpush3.bf16.msra.mxu1 %v1743_v4  ;;  %3244 = vmatprep.mubr.msk.bf16.mxu1 %vm4100_vm5, %v4099_v36 }
 0x817   : > { %3254 = vmatprep.subr.bf16.mxu1 %v4099_v36 }
 0x81a   : > { %v3581_v6 = vpop.eup %3580 }
 0x81b   : > { %v1739_v10 = vmul.f32 %v3581_v6, %v3565_v30 }
 0x81d   : > { %v1986_v7 = vpop.xlane.xlu0 %1985 }
 0x821   : > { %v1868_v15 = vpop.permute.xlu0 %1867 }
 0x838   : > { %v1732_v35 = vpop.xlane.xlu1 %1731 }
 0x839   : > { %3582 = vrcp.f32 %v1732_v35 }
 0x83c   : > { %v1858_v62 = vpop.xlane.xlu1 %1857 }
 0x83d   : > { %3584 = vrcp.f32 %v1858_v62 }
 0x83e   : > { %3586 = vrcp.f32 %v1861_v60 }
 0x840   : > { %v1983_v8 = vpop.xlane.xlu1 %1982 }
 0x841   : > { %3588 = vrcp.f32 %v1983_v8 }
 0x842   : > { %3590 = vrcp.f32 %v1986_v7 }
 0x843   : > { %v3583_v9 = vpop.eup %3582 }
 0x844   : > { %v1738_v11 = vmul.f32 %v3583_v9, %v3571_v52  ;;  %v1993_v23 = vpop.permute.xlu1 %1992 }
 0x846   : > { %v1740_v12 = vpack.c.bf16 %v1739_v10, %v1738_v11  ;;  %v1139_v10 = vsub.s32 1, %v4809_v45 }
 0x847   : > { %v3585_v14 = vpop.eup %3584 }
 0x848   : > { %3245 = vmatmul.mubr.msk.bf16.vlgmr.msra.gmra.mrb[16].mxu1 %vm1543_vm6, %v1740_v12  ;;  %v3587_v16 = vpop.eup %3586  ;;  %v1864_v19 = vmul.f32 %v3585_v14, %v3573_v56  ;;  %v1140_v11 = vrot.slane %v4814_v48, %v1139_v10 }
 0x849   : > { %3255 = vmatpush3.bf16.msra.mxu1 %v1868_v15  ;;  %3256 = vmatprep.mubr.msk.bf16.mxu1 %vm4100_vm5, %v4099_v36  ;;  %v1865_v20 = vmul.f32 %v3587_v16, %v4913_v34 }
 0x84a   : > { %3266 = vmatprep.subr.bf16.mxu1 %v4099_v36  ;;  %v1221_v12 = vadd.f32 %v4821_v53, %v1140_v11  ;;  %v1225_v15 = vadd.f32 %v4823_v57, %v1140_v11  ;;  %v3543_v11 = vld [vmem:[%s4746_s22 + $0x8] sm:$0xff]  }
 0x84b   : > { %v1866_v21 = vpack.c.bf16 %v1865_v20, %v1864_v19  ;;  %v3589_v22 = vpop.eup %3588 }
 0x84c   : > { %v3591_v25 = vpop.eup %3590  ;;  %v1989_v26 = vmul.f32 %v3589_v22, %v3575_v58 }
 0x84d   : > { %v1990_v28 = vmul.f32 %v3591_v25, %v4919_v38 }
 0x84f   : > { %v1991_v30 = vpack.c.bf16 %v1990_v28, %v1989_v26 }
 0x850   : > { %3257 = vmatmul.mubr.msk.bf16.vlgmr.msra.gmra.mrb[20].mxu1 %vm1543_vm6, %v1866_v21 }
 0x851   : > { %3267 = vmatpush3.bf16.msra.mxu1 %v1993_v23  ;;  %3268 = vmatprep.mubr.msk.bf16.mxu1 %vm4100_vm5, %v4099_v36 }
 0x858   : > { %3269 = vmatmul.mubr.msk.bf16.vlgmr.msra.gmra.mrb[24].mxu1 %vm1543_vm6, %v1991_v30 }
 0x859   : > { %2296 = vmatprep.mubr.bf16.mxu1 %v4098_v18 }
 0x8e8   : > { %v1655_v31 = vpop.f32.mrb[12].mxu1 }
 0x8e9   : > { %v3234_v32 = vpop.f32.mrb[13].mxu1 }
 0x8ea   : > { %v1658_v33 = vpop.f32.mrb[14].mxu1 }
 0x8eb   : > { %v3235_v34 = vpop.f32.mrb[15].mxu1 }
 0x91b   : > { %v1782_v39 = vpop.f32.mrb[16].mxu1 }
 0x91c   : > { %v3246_v40 = vpop.f32.mrb[17].mxu1 }
 0x91d   : > { %v1785_v43 = vpop.f32.mrb[18].mxu1  ;;  %v3528_v40 = vld [vmem:[%s4740_s16] ss:$8 sps:$4 sm:$0xff]  }
 0x91e   : > { %v3485_v38 = vpack.i.bf16 %v1785_v43, %v1782_v39  ;;  %v3247_v44 = vpop.f32.mrb[19].mxu1  ;;  %v3530_v39 = vld [vmem:[%s4740_s16 + $0x4] ss:$8 sps:$4 sm:$0xff]   ;;  %v3531_v43 = vld [vmem:[%s4740_s16 + $0x10] ss:$8 sps:$4 sm:$0xff]  }
 0x91f   : > { %2264 = vmatprep.subr.bf16.mxu1 %v3530_v39  ;;  %v3534_v44 = vld [vmem:[%s4740_s16 + $0x20] ss:$8 sps:$4 sm:$0xff]  }
 0x920   : > { %3486 = vrot.lane.b32.xlu1 %v3485_v38, %s4105_s30  ;;  %2265 = vmatpush1.bf16.msra.mxu1 %v3528_v40  ;;  %v3536_v38 = vld [vmem:[%s4740_s16 + $0x24] ss:$8 sps:$4 sm:$0xff]  }
 0x921   : > { %2266 = vmatprep.subr.bf16.mxu1 %v3533_v42 }
 0x923   : > { %v1907_v18 = vpop.f32.mrb[20].mxu1 }
 0x924   : > { %v3258_v49 = vpop.f32.mrb[21].mxu1  ;;  %2267 = vmatpush1.bf16.msra.mxu1 %v3531_v43 }
 0x925   : > { %v1910_v51 = vpop.f32.mrb[22].mxu1  ;;  %2268 = vmatprep.subr.bf16.mxu1 %v3536_v38 }
 0x926   : > { %v3490_v52 = vpack.i.bf16 %v1910_v51, %v1907_v18  ;;  %v3259_v54 = vpop.f32.mrb[23].mxu1  ;;  %v3537_v18 = vld [vmem:[%s4740_s16 + $0x30] ss:$8 sps:$4 sm:$0xff]   ;;  %s5211_s16 = scalar_lea.vmem [#allocation16], %s4680_s27 }
 0x928   : > { %3491 = vrot.lane.b32.xlu1 %v3490_v52, %s4103_s17  ;;  %2269 = vmatpush1.bf16.msra.mxu1 %v3534_v44 }
 0x929   : > { %2270 = vmatprep.subr.bf16.mxu1 %v3539_v47 }
 0x92b   : > { %v2032_v56 = vpop.f32.mrb[24].mxu1 }
 0x92c   : > { %v3270_v41 = vpop.f32.mrb[25].mxu1  ;;  %2271 = vmatpush1.bf16.msra.mxu1 %v3537_v18 }
 0x92d   : > { %v2035_v58 = vpop.f32.mrb[26].mxu1  ;;  %v1143_v41 = vsub.s32 2, %v4809_v45 }
 0x92e   : > { %v3495_v55 = vpack.i.bf16 %v2035_v58, %v2032_v56  ;;  %v3271_v59 = vpop.f32.mrb[27].mxu1 }
 0x92f   : > { %v1144_v58 = vrot.slane %v4814_v48, %v1143_v41  ;;  %v3089_v59 = vld [vmem:[%s5210_s15] ss:$0 sm:$0xff] }
 0x930   : > { %3496 = vrot.lane.b32.xlu0 %v3495_v55, %s4102_s13 }
 0x992   : > { %v3487_v61 = vpop.permute.xlu1 %3486 }
 0x993   : > { %v3489_v0 = vunpack.i.h.bf16 %v3487_v61  ;;  %v3488_v1 = vunpack.i.l.bf16 %v3487_v61  ;;  %v4996_v61 = vadd.f32 %v4858_v27, %v1144_v58 }
 0x995   : > { %v2064_v4 = vsel %vm1543_vm6, %v1658_v33, %v3489_v0  ;;  %v2063_v5 = vsel %vm1543_vm6, %v1655_v31, %v3488_v1  ;;  %v4999_v0 = vadd.f32 %v4860_v29, %v1144_v58 }
 0x997   : > { %v2187_v48 = vadd.f32 1.0, %v4999_v0 }
 0x99a   : > { %v3492_v63 = vpop.permute.xlu1 %3491 }
 0x99b   : > { %v3494_v36 = vunpack.i.h.bf16 %v3492_v63  ;;  %v3493_v2 = vunpack.i.l.bf16 %v3492_v63 }
 0x99d   : > { %v2066_v62 = vsel %vm1180_vm4, %v2064_v4, %v3494_v36  ;;  %v2065_v6 = vsel %vm1180_vm4, %v2063_v5, %v3493_v2  ;;  %v2186_v2 = vadd.f32 1.0, %v4996_v61 }
 0x9a2   : > { %v3497_v3 = vpop.permute.xlu0 %3496 }
 0x9a3   : > { %v3499_v35 = vunpack.i.h.bf16 %v3497_v3  ;;  %v3498_v60 = vunpack.i.l.bf16 %v3497_v3 }
 0x9a5   : > { %v2069_v7 = vsel %vm2067_vm7, %v2066_v62, %v3499_v35  ;;  %v2068_v8 = vsel %vm2067_vm7, %v2065_v6, %v3498_v60 }
 0x9a6   : > { %v2070_v9 = vpack.c.bf16 %v2069_v7, %v2068_v8  ;;  %v3540_v7 = vld [vmem:[%s4746_s22 + $0x40] sm:$0xff]  }
 0x9a7   : > { %v3541_v8 = vld [vmem:[%s4746_s22] sm:$0xff]   ;;  %3166 = vmatprep.subr.bf16.mxu0 %v3540_v7 }
 0x9a8   : > { %3281 = vmatmul.mubr.msk.bf16.vlgmr.msra.gmra.mrb[20].mxu0 %vm1269_vm3, %v2070_v9  ;;  %v3542_v9 = vld [vmem:[%s4746_s22 + $0x48] sm:$0xff]  }
 0x9a9   : > { %3167 = vmatpush3.bf16.msra.mxu0 %v3541_v8 }
 0x9aa   : > { %3168 = vmatprep.subr.bf16.mxu0 %v3542_v9 }
 0x9ad   : > { %3169 = vmatpush3.bf16.msra.mxu0 %v3543_v11 }
 0xa7b   : > { %v2140_v14 = vpop.f32.mrb[20].mxu0 }
 0xa7c   : > { %v2147_v16 = vmul.f32 %v2140_v14, %v1221_v12  ;;  %v3282_v19 = vpop.f32.mrb[21].mxu0  ;;  %v3545_v14 = vld [vmem:[%s4746_s22 + $0x10] sm:$0xff]  }
 0xa7d   : > { %v2143_v20 = vpop.f32.mrb[22].mxu0  ;;  %v3548_v19 = vld [vmem:[%s4746_s22 + $0x60] sm:$0xff]  }
 0xa7e   : > { %v4968_v21 = vadd.f32 %v2147_v16, %v4756_v13  ;;  %v2148_v22 = vmul.f32 %v2143_v20, %v1225_v15  ;;  %v3283_v23 = vpop.f32.mrb[23].mxu0  ;;  %v3547_v16 = vld [vmem:[%s4746_s22 + $0x18] sm:$0xff]   ;;  %v3549_v20 = vld [vmem:[%s4746_s22 + $0x20] sm:$0xff]  }
 0xa7f   : > { %v3551_v23 = vld [vmem:[%s4746_s22 + $0x28] sm:$0xff]  }
 0xa80   : > { %v4971_v25 = vadd.f32 %v2148_v22, %v4762_v17  ;;  %v2152_v26 = vsel %vm1269_vm3, %v4968_v21, 0.0  ;;  %v3550_v22 = vld [vmem:[%s4746_s22 + $0x68] sm:$0xff]  }
 0xa81   : > { %2153 = vadd.xlane.f32.xlu1 %v2152_v26  ;;  %v3552_v26 = vld [vmem:[%s4746_s22 + $0x70] sm:$0xff]  }
 0xa82   : > { %v2155_v53 = vsel %vm1269_vm3, %v4971_v25, 0.0 }
 0xa83   : > { %2156 = vadd.xlane.f32.xlu0 %v2155_v53  ;;  %v3553_v53 = vld [vmem:[%s4746_s22 + $0x30] sm:$0xff]  }
 0xa92   : > { %2192 = vrot.lane.b32.xlu1 %v1221_v12, %s4101_s1  ;;  %v3544_v12 = vld [vmem:[%s4746_s22 + $0x50] sm:$0xff]  }
 0xa93   : > { %3170 = vmatprep.subr.bf16.mxu0 %v3544_v12 }
 0xa94   : > { %3171 = vmatpush3.bf16.msra.mxu0 %v3545_v14 }
 0xb0e   : > { %v2154_v57 = vpop.xlane.xlu1 %2153 }
 0xb0f   : > { %v2158_v13 = vmul.f32 0.015625, %v2154_v57  ;;  %v3554_v57 = vld [vmem:[%s4746_s22 + $0x78] sm:$0xff]  }
 0xb10   : > { %v2157_v28 = vpop.xlane.xlu0 %2156 }
 0xb11   : > { %v2160_v17 = vsub.f32 %v4968_v21, %v2158_v13  ;;  %v2159_v30 = vmul.f32 0.015625, %v2157_v28  ;;  %v3555_v13 = vld [vmem:[%s4746_s22 + $0x38] sm:$0xff]  }
 0xb12   : > { %v2193_v35 = vpop.permute.xlu1 %2192  ;;  %v2209_v28 = vld [vmem:[%s4691_s11] sm:$0x3] }
 0xb13   : > { %v2161_v31 = vsub.f32 %v4971_v25, %v2159_v30  ;;  %v2162_v32 = vmul.f32 %v2160_v17, %v2160_v17  ;;  %v2218_v30 = vrot.slane %v2209_v28, %v1139_v10 }
 0xb15   : > { %v2164_v33 = vsel %vm1269_vm3, %v2162_v32, 0.0  ;;  %v2163_v34 = vmul.f32 %v2161_v31, %v2161_v31 }
 0xb16   : > { %2165 = vadd.xlane.f32.xlu0 %v2164_v33 }
 0xb17   : > { %v2167_v37 = vsel %vm1269_vm3, %v2163_v34, 0.0 }
 0xb1a   : > { %2168 = vadd.xlane.f32.xlu0 %v2167_v37 }
 0xb30   : > { %2194 = vrot.lane.b32.xlu0 %v1225_v15, %s4101_s1  ;;  %v3546_v15 = vld [vmem:[%s4746_s22 + $0x58] sm:$0xff]   ;;  %s5212_s22 = sld [smem:[#allocation58_spill]] (!%p3116_p6) }
 0xb31   : > { %3172 = vmatprep.subr.bf16.mxu0 %v3546_v15 }
 0xb32   : > { %3173 = vmatpush3.bf16.msra.mxu0 %v3547_v16  ;;  %v3099_v16 = vld [vmem:[%s5211_s16] ss:$0 sm:$0xff] }
 0xb33   : > { %3174 = vmatprep.subr.bf16.mxu0 %v3548_v19 }
 0xb36   : > { %3175 = vmatpush3.bf16.msra.mxu0 %v3549_v20 }
 0xb37   : > { %3176 = vmatprep.subr.bf16.mxu0 %v3550_v22 }
 0xb3a   : > { %3177 = vmatpush3.bf16.msra.mxu0 %v3551_v23 }
 0xb3b   : > { %3178 = vmatprep.subr.bf16.mxu0 %v3552_v26 }
 0xb3e   : > { %3179 = vmatpush3.bf16.msra.mxu0 %v3553_v53 }
 0xb3f   : > { %3180 = vmatprep.subr.bf16.mxu0 %v3554_v57 }
 0xb42   : > { %3181 = vmatpush3.bf16.msra.mxu0 %v3555_v13 }
 0xba3   : > { %v2166_v49 = vpop.xlane.xlu0 %2165 }
 0xba4   : > { %v2170_v50 = vmul.f32 0.015625, %v2166_v49 }
 0xba6   : > { %v2172_v51 = vadd.f32 1e-05, %v2170_v50 }
 0xba7   : > { %v2169_v52 = vpop.xlane.xlu0 %2168 }
 0xba8   : > { %3592 = vrsqrt.f32 %v2172_v51  ;;  %v2171_v54 = vmul.f32 0.015625, %v2169_v52 }
 0xbaa   : > { %v2173_v56 = vadd.f32 1e-05, %v2171_v54 }
 0xbab   : > { %v2195_v60 = vpop.permute.xlu0 %2194 }
 0xbac   : > { %3594 = vrsqrt.f32 %v2173_v56 }
 0xbb2   : > { %v3593_v55 = vpop.eup %3592 }
 0xbb3   : > { %v2176_v63 = vmul.f32 %v3593_v55, %v2160_v17  ;;  %v2214_v17 = vrot.slane %v2209_v28, %v1135_v46 }
 0xbb5   : > { %v2184_v1 = vmul.f32 %v3089_v59, %v2176_v63 }
 0xbb6   : > { %v3595_v36 = vpop.eup %3594 }
 0xbb7   : > { %v2177_v3 = vmul.f32 %v3595_v36, %v2161_v31  ;;  %v2188_v5 = vmul.f32 %v2186_v2, %v2184_v1 }
 0xbb9   : > { %v2185_v4 = vmul.f32 %v3089_v59, %v2177_v3  ;;  %v2198_v62 = vadd.f32 %v2193_v35, %v2188_v5 }
 0xbbb   : > { %v2189_v27 = vmul.f32 %v2187_v48, %v2185_v4 }
 0xbbd   : > { %v2199_v29 = vadd.f32 %v2195_v60, %v2189_v27 }
 0xbbf   : > { %v2200_v6 = vpack.c.bf16 %v2199_v29, %v2198_v62 }
 0xbc1   : > { %3098 = vmatmul.mubr.msk.bf16.vlgmr.msra.gmra.mrb[28].mxu1 %vm1269_vm3, %v2200_v6 }
 0xc94   : > { %v2298_v31 = vpop.f32.mrb[28].mxu1 }
 0xc95   : > { %v2299_v32 = vadd.f32 %v2298_v31, %v2214_v17  ;;  %v2300_v33 = vpop.f32.mrb[29].mxu1 }
 0xc96   : > { %v2301_v34 = vadd.f32 %v2300_v33, %v2218_v30  ;;  %v2302_v37 = vpop.f32.mrb[30].mxu1 }
 0xc97   : > { %v2311_v39 = vmul.f32 0.044715, %v2299_v32  ;;  %v2303_v40 = vadd.f32 %v2302_v37, %v2214_v17  ;;  %v2304_v42 = vpop.f32.mrb[31].mxu1  ;;  %v2307_v27 = vmul.f32 0.5, %v2299_v32  ;;  %v4108_v37 = vmov (!%p3116_p6), 0.0  }
 0xc98   : > { %v2312_v43 = vmul.f32 0.044715, %v2301_v34  ;;  %v2305_v38 = vadd.f32 %v2304_v42, %v2218_v30  ;;  %v2308_v62 = vmul.f32 0.5, %v2301_v34  ;;  %3284 = vmatprep.subr.bf16.mxu0 (!%p3116_p6), %v4108_v37  ;;  %3292 = vmatprep.subr.bf16.mxu1 (!%p3116_p6), %v4108_v37 }
 0xc99   : > { %v2315_v44 = vmul.f32 %v2311_v39, %v2299_v32  ;;  %v2313_v47 = vmul.f32 0.044715, %v2303_v40  ;;  %v2309_v35 = vmul.f32 0.5, %v2303_v40  ;;  %3300 = vmatprep.mubr.msk.bf16.mxu1 (!%p3116_p6), %vm4109_vm8, %v4108_v37 }
 0xc9a   : > { %v2316_v18 = vmul.f32 %v2312_v43, %v2301_v34  ;;  %v2314_v49 = vmul.f32 0.044715, %v2305_v38  ;;  %v2310_v29 = vmul.f32 0.5, %v2305_v38 }
 0xc9b   : > { %v2319_v50 = vmul.f32 %v2315_v44, %v2299_v32  ;;  %v2317_v51 = vmul.f32 %v2313_v47, %v2303_v40 }
 0xc9c   : > { %v2320_v46 = vmul.f32 %v2316_v18, %v2301_v34  ;;  %v2318_v52 = vmul.f32 %v2314_v49, %v2305_v38 }
 0xc9d   : > { %v2323_v45 = vadd.f32 %v2319_v50, %v2299_v32  ;;  %v2321_v10 = vmul.f32 %v2317_v51, %v2303_v40  ;;  %v3606_v51 = vld [vmem:[#allocation22] sm:$0xff] (!%p3116_p6)  }
 0xc9e   : > { %v2322_v54 = vmul.f32 %v2318_v52, %v2305_v38  ;;  %v2324_v56 = vadd.f32 %v2320_v46, %v2301_v34  ;;  %3293 = vmatpush3.bf16.msra.mxu1 (!%p3116_p6), %v3606_v51  ;;  %v3607_v46 = vld [vmem:[#allocation22 + $0x8] sm:$0xff] (!%p3116_p6)   ;;  %v3609_v52 = vld [vmem:[#allocation22 + $0x18] sm:$0xff] (!%p3116_p6)  }
 0xc9f   : > { %v2327_v41 = vmul.f32 0.7978846, %v2323_v45  ;;  %v2325_v58 = vadd.f32 %v2321_v10, %v2303_v40  ;;  %v3605_v40 = vld [vmem:[#allocation19 + $0x8] sm:$0xff] (!%p3116_p6)   ;;  %3294 = vmatprep.subr.bf16.mxu1 (!%p3116_p6), %v4108_v37  ;;  %v3117_v45 = vld [vmem:[#allocation20] ss:$0 sm:$0xff] (!%p3116_p6) }
 0xca0   : > { %v2326_v55 = vadd.f32 %v2322_v54, %v2305_v38  ;;  %v2328_v59 = vmul.f32 0.7978846, %v2324_v56 }
 0xca1   : > { %3596 = vtanh.f32 %v2327_v41  ;;  %v2329_v63 = vmul.f32 0.7978846, %v2325_v58 }
 0xca2   : > { %v2330_v1 = vmul.f32 0.7978846, %v2326_v55  ;;  %3598 = vtanh.f32 %v2328_v59  ;;  %3295 = vmatpush3.bf16.msra.mxu1 (!%p3116_p6), %v3607_v46 }
 0xca3   : > { %3600 = vtanh.f32 %v2329_v63  ;;  %3296 = vmatprep.subr.bf16.mxu1 (!%p3116_p6), %v4108_v37 }
 0xca4   : > { %3602 = vtanh.f32 %v2330_v1 }
 0xcab   : > { %v3597_v36 = vpop.eup %3596 }
 0xcac   : > { %v3599_v2 = vpop.eup %3598  ;;  %v2335_v3 = vadd.f32 1.0, %v3597_v36 }
 0xcad   : > { %v3601_v48 = vpop.eup %3600  ;;  %v2336_v4 = vadd.f32 1.0, %v3599_v2 }
 0xcae   : > { %v3603_v5 = vpop.eup %3602  ;;  %v2337_v60 = vadd.f32 1.0, %v3601_v48  ;;  %v2339_v7 = vmul.f32 %v2335_v3, %v2307_v27 }
 0xcaf   : > { %v2338_v6 = vadd.f32 1.0, %v3603_v5  ;;  %v2340_v9 = vmul.f32 %v2336_v4, %v2308_v62 }
 0xcb0   : > { %v2341_v8 = vmul.f32 %v2337_v60, %v2309_v35  ;;  %v3121_v60 = vld [vmem:[#allocation17] ss:$0 sm:$0xff] (!%p3116_p6) }
 0xcb1   : > { %v2342_v11 = vmul.f32 %v2338_v6, %v2310_v29 }
 0xcb2   : > { %v2343_v12 = vpack.c.bf16 %v2341_v8, %v2339_v7 }
 0xcb3   : > { %v2344_v14 = vpack.c.bf16 %v2342_v11, %v2340_v9 }
 0xcb5   : > { %2512 = vmatprep.mubr.bf16.mxu0 %v2344_v14 }
 0xcb6   : > { %2513 = vmatmul.mubr.bf16.vlgmr.msra.gmra.mrb[24].mxu0 %v2343_v12 }
 0xcb7   : > { %3288 = vmatprep.mubr.msk.bf16.mxu0 (!%p3116_p6), %vm4109_vm8, %v4108_v37 }
 0xd89   : > { %v3182_v15 = vpop.f32.mrb[24].mxu0 }
 0xd8a   : > { %v3183_v19 = vpop.f32.mrb[25].mxu0 }
 0xd8b   : > { %v3184_v20 = vadd.f32 %v3183_v19, %v3182_v15  ;;  %v3185_v22 = vpop.f32.mrb[26].mxu0 }
 0xd8c   : > { %v3186_v23 = vpop.f32.mrb[27].mxu0 }
 0xd8d   : > { %v2515_v26 = vadd.f32 %v3184_v20, %v3099_v16  ;;  %v3187_v53 = vadd.f32 %v3186_v23, %v3185_v22 }
 0xd8f   : > { %2523 = vrot.lane.b32.xlu1 %v2515_v26, %s4101_s1  ;;  %v2518_v57 = vadd.f32 %v3187_v53, %v3099_v16  ;;  %v3122_v16 = vld [vmem:[#allocation23] ss:$0 sm:$0xff] (!%p3116_p6) }
 0xd93   : > { %2525 = vrot.lane.b32.xlu1 %v2518_v57, %s4101_s1 }
 0xe01   : > { %v2524_v13 = vpop.permute.xlu1 %2523 }
 0xe02   : > { %v2529_v28 = vmul.f32 %v2524_v13, %v4996_v61 }
 0xe04   : > { %2533 = vrot.lane.b32.xlu1 %v2529_v28, %s4101_s1 }
 0xe05   : > { %v2526_v17 = vpop.permute.xlu1 %2525 }
 0xe06   : > { %v2530_v30 = vmul.f32 %v2526_v17, %v4999_v0  ;;  %v3604_v0 = vld [vmem:[#allocation19] sm:$0xff] (!%p3116_p6)  }
 0xe07   : > { %3285 = vmatpush3.bf16.msra.mxu0 (!%p3116_p6), %v3604_v0 }
 0xe08   : > { %2535 = vrot.lane.b32.xlu0 %v2530_v30, %s4101_s1  ;;  %3286 = vmatprep.subr.bf16.mxu0 (!%p3116_p6), %v4108_v37 }
 0xe0b   : > { %3287 = vmatpush3.bf16.msra.mxu0 (!%p3116_p6), %v3605_v40 }
 0xe0e   : > { %3289 = vmatmul.mubr.msk.bf16.vlgmr.msra.gmra.mrb[0].mxu0 (!%p3116_p6), %vm1180_vm4, %v4775_v24  ;;  %v3608_v24 = vld [vmem:[#allocation22 + $0x10] sm:$0xff] (!%p3116_p6)  }
 0xe0f   : > { %3297 = vmatpush3.bf16.msra.mxu1 (!%p3116_p6), %v3608_v24 }
 0xe10   : > { %3298 = vmatprep.subr.bf16.mxu1 (!%p3116_p6), %v4108_v37 }
 0xe13   : > { %3299 = vmatpush3.bf16.msra.mxu1 (!%p3116_p6), %v3609_v52 }
 0xe76   : > { %v2534_v31 = vpop.permute.xlu1 %2533 }
 0xe77   : > { %v2539_v32 = vadd.f32 %v2534_v31, %v4968_v21  ;;  %2546 = sbr.rel (%p3116_p6) target bundleno = 4243 (0x1093), region = 172 }
 0xe79   : > { %2541 = vst.msk [vmem:[#allocation2] sm:$0xff] %vm1269_vm3, %v2539_v32  ;;  %v2612_v61 = vsel (!%p3116_p6), %vm1269_vm3, %v2539_v32, 0.0 }
 0xe7a   : > { %v2536_v33 = vpop.permute.xlu0 %2535  ;;  %2613 = vadd.xlane.f32.xlu0 (!%p3116_p6), %v2612_v61 }
 0xe7b   : > { %v2540_v34 = vadd.f32 %v2536_v33, %v4971_v25 }
 0xe7d   : > { %2542 = vst.msk [vmem:[#allocation2 + $0x8] sm:$0xff] %vm1269_vm3, %v2540_v34  ;;  %v2615_v39 = vsel (!%p3116_p6), %vm1269_vm3, %v2540_v34, 0.0 }
 0xe7e   : > { %2616 = vadd.xlane.f32.xlu0 %v2615_v39 }
 0xee1   : > { %v2604_v10 = vpop.f32.mrb[0].mxu0 }
 0xee2   : > { %v2605_v54 = vadd.f32 %v3117_v45, %v2604_v10  ;;  %v3290_v56 = vpop.f32.mrb[1].mxu0 }
 0xee3   : > { %v2607_v41 = vpop.f32.mrb[2].mxu0 }
 0xee4   : > { %v2646_v58 = vadd.f32 1.0, %v2605_v54  ;;  %v2608_v55 = vadd.f32 %v3117_v45, %v2607_v41  ;;  %v3291_v59 = vpop.f32.mrb[3].mxu0 }
 0xee6   : > { %v2647_v63 = vadd.f32 1.0, %v2608_v55  ;;  %2650 = vrot.lane.b32.xlu0 %v2646_v58, %s4110_s4 }
 0xf07   : > { %v2614_v21 = vpop.xlane.xlu0 %2613 }
 0xf08   : > { %v2618_v25 = vmul.f32 0.015625, %v2614_v21 }
 0xf0a   : > { %v2620_v42 = vsub.f32 %v2539_v32, %v2618_v25 }
 0xf0b   : > { %v2617_v43 = vpop.xlane.xlu0 %2616 }
 0xf0c   : > { %v2619_v38 = vmul.f32 0.015625, %v2617_v43  ;;  %v2622_v44 = vmul.f32 %v2620_v42, %v2620_v42 }
 0xf0e   : > { %v2621_v47 = vsub.f32 %v2540_v34, %v2619_v38  ;;  %v2624_v18 = vsel %vm1269_vm3, %v2622_v44, 0.0 }
 0xf0f   : > { %2625 = vadd.xlane.f32.xlu1 %v2624_v18 }
 0xf10   : > { %v2623_v49 = vmul.f32 %v2621_v47, %v2621_v47 }
 0xf12   : > { %v2627_v50 = vsel %vm1269_vm3, %v2623_v49, 0.0 }
 0xf13   : > { %2628 = vadd.xlane.f32.xlu1 %v2627_v50 }
 0xf24   : > { %2652 = vrot.lane.b32.xlu1 %v2647_v63, %s4110_s4 }
 0xf58   : > { %v2651_v6 = vpop.permute.xlu0 %2650 }
 0xf9c   : > { %v2626_v1 = vpop.xlane.xlu1 %2625 }
 0xf9d   : > { %v2630_v2 = vmul.f32 0.015625, %v2626_v1 }
 0xf9f   : > { %v2632_v48 = vadd.f32 1e-05, %v2630_v2 }
 0xfa0   : > { %v2629_v36 = vpop.xlane.xlu1 %2628 }
 0xfa1   : > { %v2631_v3 = vmul.f32 0.015625, %v2629_v36  ;;  %3610 = vrsqrt.f32 %v2632_v48 }
 0xfa3   : > { %v2633_v4 = vadd.f32 1e-05, %v2631_v3 }
 0xfa4   : > { %v2653_v9 = vpop.permute.xlu1 %2652 }
 0xfa5   : > { %3612 = vrsqrt.f32 %v2633_v4 }
 0xfab   : > { %v3611_v5 = vpop.eup %3610 }
 0xfac   : > { %v2636_v35 = vmul.f32 %v3611_v5, %v2620_v42 }
 0xfae   : > { %v2644_v29 = vmul.f32 %v3121_v60, %v2636_v35 }
 0xfaf   : > { %v3613_v27 = vpop.eup %3612 }
 0xfb0   : > { %v2637_v62 = vmul.f32 %v3613_v27, %v2621_v47  ;;  %v2656_v7 = vmul.f32 %v2651_v6, %v2644_v29 }
 0xfb2   : > { %v2645_v8 = vmul.f32 %v3121_v60, %v2637_v62  ;;  %v2658_v12 = vadd.f32 %v2656_v7, %v2605_v54 }
 0xfb4   : > { %v2657_v11 = vmul.f32 %v2653_v9, %v2645_v8 }
 0xfb6   : > { %v2659_v14 = vadd.f32 %v2657_v11, %v2608_v55 }
 0xfb8   : > { %v2660_v15 = vpack.c.bf16 %v2659_v14, %v2658_v12 }
 0xfba   : > { %3301 = vmatmul.mubr.msk.bf16.vlgmr.msra.gmra.mrb[0].mxu1 %vm1269_vm3, %v2660_v15 }
0x108d   : > { %v2737_v19 = vpop.f32.mrb[0].mxu1 }
0x108e   : > { %v2738_v20 = vadd.f32 %v3122_v16, %v2737_v19  ;;  %v3302_v22 = vpop.f32.mrb[1].mxu1 }
0x108f   : > { %v2740_v23 = vpop.f32.mrb[2].mxu1 }
0x1090   : > { %2744 = vst [vmem:[%s5212_s22] sm:$0xff] %v2738_v20  ;;  %v2741_v26 = vadd.f32 %v3122_v16, %v2740_v23  ;;  %v3303_v53 = vpop.f32.mrb[3].mxu1 }
0x1092   : > { %2745 = vst [vmem:[%s5212_s22 + $0x8] sm:$0xff] %v2741_v26 }
0x1093 PF: > { %s5213_s30 = sld [smem:[#allocation35_spill]]  ;;  %s5214_s23 = sld [smem:[#allocation33_spill]] }
0x1094   : > { %s5215_s29 = sld [smem:[#allocation36_spill]]  ;;  %s5216_s3 = smov %s4068_s28 }
0x1099   : > { %p41_p8 = scmp.ge.s32.totalorder %s5213_s30, 4   ;;  %s5217_s28 = smov %s5214_s23 }
0x109b   :  { %43 = sbr.rel (!%p41_p8) target bundleno = 33 (0x21), region = 246 }
0x10a2   :  { %2757 = vsyncpa [#allocation4], 1 }
0x10a3   :  { %2759 = vsyncpa [#allocation4 + $0x1], 1 }
0x10a4   :  { %2760 = vsyncpa [#allocation6], 1 }
0x10a5   :  { %2761 = vsyncpa [#allocation9], 1 }
0x10a6   :  { %2762 = vsyncpa [#allocation12], 1 }
0x10a7   :  { %2764 = vsyncpa [#allocation12 + $0x1], 1 }
0x10a8   :  { %2765 = vsyncpa [#allocation15], 1 }
0x10a9   :  { %2767 = vsyncpa [#allocation15 + $0x1], 1 }
0x10aa   :  { %2768 = vsyncpa [#allocation18], 1 }
0x10ab   :  { %2769 = vsyncpa [#allocation21], 1 }
0x10ac   :  { %2770 = vsyncpa [#allocation24], 1 }

</bundles_post_ra>
